<compile_context>
chip_gen: v7x
topology: tpu7x:2x2x1
jax: 0.10.0
libtpu: 0.0.40
codegen_flags: <defaults>
</compile_context>

<pallas_src>
import jax
import jax.numpy as jnp
import numpy as np
from jax.experimental import pallas as pl
from jax.experimental.pallas import tpu as pltpu

CHANNELS = 1
IMG_SIZE = 28
IMG_SHAPE = (CHANNELS, IMG_SIZE, IMG_SIZE)
IN_FEATURES = int(np.prod(IMG_SHAPE))  # 784 (divisible by 8; full-extent lane dim is legal)
H1 = 512
H2 = 256
OUT = 1
MAX_TB = 512  # batch-tile cap: keeps f32 x tiles + temporaries well inside v5e's scoped VMEM


def _round_up(n, m):
    return ((n + m - 1) // m) * m


def discriminator_kernel(x_ref, w1_ref, b1_ref, w2_ref, b2_ref, w3_ref, b3_ref, o_ref):
    # x_ref: (TB, 784) f32  | w1: (784, 512) bf16 | w2: (512, 256) bf16
    # w3:   (1, 256) f32 (row of the final linear) | biases f32 | out (TB, 1) f32
    x = x_ref[...].astype(jnp.bfloat16)  # cast in VMEM; raw f32 rows come from HBM

    # Layer 1: MXU matmul (bf16 in, f32 acc) + bias + LeakyReLU(0.2) on the VPU.
    h1 = jnp.dot(x, w1_ref[...], preferred_element_type=jnp.float32)
    h1 = h1 + b1_ref[...]
    h1 = jnp.maximum(h1, 0.2 * h1)

    # Layer 2: activation back to bf16 for the MXU, accumulate in f32.
    h2 = jnp.dot(h1.astype(jnp.bfloat16), w2_ref[...],
                 preferred_element_type=jnp.float32)
    h2 = h2 + b2_ref[...]
    h2 = jnp.maximum(h2, 0.2 * h2)

    # Layer 3 (256 -> 1): VPU multiply + lane (XLU) reduction instead of N=1 matmul.
    h3 = jnp.sum(h2 * w3_ref[...], axis=-1, keepdims=True) + b3_ref[...]

    o_ref[...] = jax.nn.sigmoid(h3)


def _const(i):
    return (0, 0)


def _resident_spec(block_shape, single_buffer):
    """Spec for an operand whose block never changes across the grid (weights/biases)."""
    if single_buffer:
        # Constant index_map -> the second pipeline buffer is never swapped; drop it.
        return pl.BlockSpec(block_shape, _const, pipeline_mode=pl.Buffered(1))
    return pl.BlockSpec(block_shape, _const)


def _run_kernel(x, w1b, b1, w2b, b2, w3row, b3, TB, single_buffer):
    B = x.shape[0]
    grid = (pl.cdiv(B, TB),)  # ragged last block is masked; no batch-pad copy needed
    return pl.pallas_call(
        discriminator_kernel,
        out_shape=jax.ShapeDtypeStruct((B, OUT), jnp.float32),
        grid=grid,
        in_specs=[
            pl.BlockSpec((TB, IN_FEATURES), lambda i: (i, 0)),  # x tile: raw f32, double-buffered
            _resident_spec((IN_FEATURES, H1), single_buffer),   # w1 (bf16), VMEM-resident
            _resident_spec((1, H1), single_buffer),             # b1 (f32)
            _resident_spec((H1, H2), single_buffer),            # w2 (bf16)
            _resident_spec((1, H2), single_buffer),             # b2 (f32)
            _resident_spec((1, H2), single_buffer),             # w3 row (f32)
            _resident_spec((1, OUT), single_buffer),            # b3 (f32)
        ],
        out_specs=pl.BlockSpec((TB, OUT), lambda i: (i, 0)),
        compiler_params=pltpu.CompilerParams(
            dimension_semantics=("parallel",),   # batch axis shards across both v7x TCs
            vmem_limit_bytes=32 * 1024 * 1024,   # headroom over v5e's 16 MiB scoped default
        ),
    )(x, w1b, b1, w2b, b2, w3row, b3)


def prepare_discriminator_params(params):
    """One-time conversion to kernel-friendly dtypes/layouts.

    Call ONCE (outside the training step) and reuse the result: this removes the
    per-call weight cast/pad HBM traffic flagged by the perf review.
    """
    w1, b1, w2, b2, w3, b3 = params
    return (
        jnp.asarray(w1, jnp.bfloat16),                     # (784, 512) MXU operand
        jnp.asarray(b1, jnp.float32).reshape(1, H1),
        jnp.asarray(w2, jnp.bfloat16),                     # (512, 256) MXU operand
        jnp.asarray(b2, jnp.float32).reshape(1, H2),
        jnp.asarray(w3, jnp.float32).reshape(H2, OUT).T,   # (1, 256) row for the VPU reduce
        jnp.asarray(b3, jnp.float32).reshape(1, OUT),
    )


def discriminator_forward(img, prepared_params):
    """img: (B, C, H, W) float32 -> validity: (B, 1) float32."""
    w1b, b1, w2b, b2, w3row, b3 = prepared_params
    B = img.shape[0]

    # Same semantics as torch .view(B, -1) on contiguous NCHW. No pad, no cast here:
    # the kernel consumes raw f32 rows and casts to bf16 inside VMEM.
    x = img.reshape(B, -1)
    if x.dtype != jnp.float32:
        x = x.astype(jnp.float32)

    # Batch tile: guarantee >= 2 grid steps once B >= 32 (so the "parallel" batch
    # axis really spans both v7x TensorCores), capped at MAX_TB for VMEM headroom.
    if B >= 32:
        TB = min(MAX_TB, _round_up(pl.cdiv(B, 2), 16))
    else:
        TB = _round_up(max(B, 1), 8)

    try:
        return _run_kernel(x, w1b, b1, w2b, b2, w3row, b3, TB, single_buffer=True)
    except Exception:
        # pl.Buffered(1) / pipeline_mode unsupported on this JAX version:
        # fall back to default double buffering (identical semantics).
        return _run_kernel(x, w1b, b1, w2b, b2, w3row, b3, TB, single_buffer=False)


def init_params(key):
    """Deterministic init mimicking torch.nn.Linear default U[-1/sqrt(fan_in), +1/sqrt(fan_in)]."""
    ks = jax.random.split(key, 6)

    def lin(kw, kb, fan_in, fan_out):
        bound = 1.0 / np.sqrt(fan_in)
        w = jax.random.uniform(kw, (fan_in, fan_out), jnp.float32, -bound, bound)
        b = jax.random.uniform(kb, (1, fan_out), jnp.float32, -bound, bound)
        return w, b

    w1, b1 = lin(ks[0], ks[1], IN_FEATURES, H1)
    w2, b2 = lin(ks[2], ks[3], H1, H2)
    w3, b3 = lin(ks[4], ks[5], H2, OUT)
    return (w1, b1, w2, b2, w3, b3)


if __name__ == "__main__":
    key = jax.random.PRNGKey(0)
    k_params, k_img = jax.random.split(key)

    params = init_params(k_params)
    prepared = prepare_discriminator_params(params)  # one-time, reused across calls

    B = 32  # small, but gives 2 grid steps (TB=16) -> exercises the megacore split
    img = jax.random.normal(k_img, (B, CHANNELS, IMG_SIZE, IMG_SIZE), jnp.float32)

    validity = discriminator_forward(img, prepared)
    validity = jax.block_until_ready(validity)

    assert validity.shape == (B, OUT)
    assert bool(jnp.all((validity >= 0.0) & (validity <= 1.0)))

    # Cross-check against a plain-JAX f32 reference of the same math
    # (tolerances loosened because the kernel runs the matmuls / input in bf16).
    w1, b1, w2, b2, w3, b3 = params
    xf = img.reshape(B, -1)
    r = xf @ w1 + b1
    r = jnp.maximum(r, 0.2 * r)
    r = r @ w2 + b2
    r = jnp.maximum(r, 0.2 * r)
    r = jax.nn.sigmoid(r @ w3 + b3)
    np.testing.assert_allclose(np.asarray(validity), np.asarray(r), rtol=2e-2, atol=2e-2)

    print("KERNEL_OK")
</pallas_src>

<mosaic_0001>
module attributes {stable_mosaic.version = 11 : i64} {
  func.func @discriminator_kernel(%arg0: i32, %arg1: memref<16x784xf32, #tpu.memory_space<vmem>>, %arg2: memref<784x512xbf16, #tpu.memory_space<vmem>>, %arg3: memref<1x512xf32, #tpu.memory_space<vmem>>, %arg4: memref<512x256xbf16, #tpu.memory_space<vmem>>, %arg5: memref<1x256xf32, #tpu.memory_space<vmem>>, %arg6: memref<1x256xf32, #tpu.memory_space<vmem>>, %arg7: memref<1x1xf32, #tpu.memory_space<vmem>>, %arg8: memref<16x1xf32, #tpu.memory_space<vmem>>) attributes {dimension_semantics = [#tpu.dimension_semantics<parallel>], iteration_bounds = array<i64: 2>, scalar_prefetch = 0 : i64, scratch_operands = 0 : i64, tpu.core_type = #tpu.core_type<tc>, window_params = [{transform_indices = @transform_0, window_bounds = array<i64: 16, 784>}, {pipeline_mode = #tpu.pipeline_mode<synchronous>, transform_indices = @transform_1, window_bounds = array<i64: 784, 512>}, {pipeline_mode = #tpu.pipeline_mode<synchronous>, transform_indices = @transform_2, window_bounds = array<i64: 1, 512>}, {pipeline_mode = #tpu.pipeline_mode<synchronous>, transform_indices = @transform_3, window_bounds = array<i64: 512, 256>}, {pipeline_mode = #tpu.pipeline_mode<synchronous>, transform_indices = @transform_4, window_bounds = array<i64: 1, 256>}, {pipeline_mode = #tpu.pipeline_mode<synchronous>, transform_indices = @transform_5, window_bounds = array<i64: 1, 256>}, {pipeline_mode = #tpu.pipeline_mode<synchronous>, transform_indices = @transform_6, window_bounds = array<i64: 1, 1>}, {transform_indices = @transform_7, window_bounds = array<i64: 16, 1>}]} {
    %c0 = arith.constant 0 : index
    %c0_0 = arith.constant 0 : index
    %0 = vector.load %arg1[%c0, %c0_0] : memref<16x784xf32, #tpu.memory_space<vmem>>, vector<16x784xf32>
    %1 = arith.truncf %0 : vector<16x784xf32> to vector<16x784xbf16>
    %c0_1 = arith.constant 0 : index
    %c0_2 = arith.constant 0 : index
    %2 = vector.load %arg2[%c0_1, %c0_2] : memref<784x512xbf16, #tpu.memory_space<vmem>>, vector<784x512xbf16>
    %cst = arith.constant dense<0.000000e+00> : vector<16x512xf32>
    %3 = tpu.matmul %1, %2, %cst {dimension_numbers = #tpu.dot_dimension_numbers<[1], [0], [0], [1], [0, 0, 1, 1], [], []>} : vector<16x784xbf16>, vector<784x512xbf16>, vector<16x512xf32> -> vector<16x512xf32>
    %c0_3 = arith.constant 0 : index
    %c0_4 = arith.constant 0 : index
    %4 = vector.load %arg3[%c0_3, %c0_4] : memref<1x512xf32, #tpu.memory_space<vmem>>, vector<1x512xf32>
    %5 = vector.broadcast %4 : vector<1x512xf32> to vector<16x512xf32>
    %6 = arith.addf %3, %5 : vector<16x512xf32>
    %cst_5 = arith.constant 2.000000e-01 : f32
    %7 = vector.broadcast %cst_5 : f32 to vector<16x512xf32>
    %8 = arith.mulf %7, %6 : vector<16x512xf32>
    %9 = arith.maximumf %6, %8 : vector<16x512xf32>
    %10 = arith.truncf %9 : vector<16x512xf32> to vector<16x512xbf16>
    %c0_6 = arith.constant 0 : index
    %c0_7 = arith.constant 0 : index
    %11 = vector.load %arg4[%c0_6, %c0_7] : memref<512x256xbf16, #tpu.memory_space<vmem>>, vector<512x256xbf16>
    %cst_8 = arith.constant dense<0.000000e+00> : vector<16x256xf32>
    %12 = tpu.matmul %10, %11, %cst_8 {dimension_numbers = #tpu.dot_dimension_numbers<[1], [0], [0], [1], [0, 0, 1, 1], [], []>} : vector<16x512xbf16>, vector<512x256xbf16>, vector<16x256xf32> -> vector<16x256xf32>
    %c0_9 = arith.constant 0 : index
    %c0_10 = arith.constant 0 : index
    %13 = vector.load %arg5[%c0_9, %c0_10] : memref<1x256xf32, #tpu.memory_space<vmem>>, vector<1x256xf32>
    %14 = vector.broadcast %13 : vector<1x256xf32> to vector<16x256xf32>
    %15 = arith.addf %12, %14 : vector<16x256xf32>
    %cst_11 = arith.constant 2.000000e-01 : f32
    %16 = vector.broadcast %cst_11 : f32 to vector<16x256xf32>
    %17 = arith.mulf %16, %15 : vector<16x256xf32>
    %18 = arith.maximumf %15, %17 : vector<16x256xf32>
    %c0_12 = arith.constant 0 : index
    %c0_13 = arith.constant 0 : index
    %19 = vector.load %arg6[%c0_12, %c0_13] : memref<1x256xf32, #tpu.memory_space<vmem>>, vector<1x256xf32>
    %20 = vector.broadcast %19 : vector<1x256xf32> to vector<16x256xf32>
    %21 = arith.mulf %18, %20 : vector<16x256xf32>
    %cst_14 = arith.constant dense<0.000000e+00> : vector<16xf32>
    %22 = vector.multi_reduction <add>, %21, %cst_14 [1] : vector<16x256xf32> to vector<16xf32>
    %23 = vector.shape_cast %22 : vector<16xf32> to vector<16x1xf32>
    %c0_15 = arith.constant 0 : index
    %c0_16 = arith.constant 0 : index
    %24 = vector.load %arg7[%c0_15, %c0_16] : memref<1x1xf32, #tpu.memory_space<vmem>>, vector<1x1xf32>
    %25 = vector.broadcast %24 : vector<1x1xf32> to vector<16x1xf32>
    %26 = arith.addf %23, %25 : vector<16x1xf32>
    %27 = arith.negf %26 : vector<16x1xf32>
    %28 = math.exp %27 : vector<16x1xf32>
    %cst_17 = arith.constant 1.000000e+00 : f32
    %29 = vector.broadcast %cst_17 : f32 to vector<16x1xf32>
    %30 = arith.addf %29, %28 : vector<16x1xf32>
    %31 = arith.divf %29, %30 : vector<16x1xf32>
    %c0_18 = arith.constant 0 : index
    %c0_19 = arith.constant 0 : index
    %32 = vector.load %arg8[%c0_18, %c0_19] : memref<16x1xf32, #tpu.memory_space<vmem>>, vector<16x1xf32>
    tpu.vector_store %arg8[%c0_18, %c0_19], %31 {strides = array<i32>} : memref<16x1xf32, #tpu.memory_space<vmem>>, vector<16x1xf32>,
    return
  }
  func.func @transform_0(%arg0: i32) -> (i32, i32) {
    %c0_i32 = arith.constant 0 : i32
    %c0_i32_0 = arith.constant 0 : i32
    return %arg0, %c0_i32 : i32, i32
  }
  func.func @transform_1(%arg0: i32) -> (i32, i32) {
    %c0_i32 = arith.constant 0 : i32
    %c0_i32_0 = arith.constant 0 : i32
    %c0_i32_1 = arith.constant 0 : i32
    return %c0_i32, %c0_i32_0 : i32, i32
  }
  func.func @transform_2(%arg0: i32) -> (i32, i32) {
    %c0_i32 = arith.constant 0 : i32
    %c0_i32_0 = arith.constant 0 : i32
    %c0_i32_1 = arith.constant 0 : i32
    return %c0_i32, %c0_i32_0 : i32, i32
  }
  func.func @transform_3(%arg0: i32) -> (i32, i32) {
    %c0_i32 = arith.constant 0 : i32
    %c0_i32_0 = arith.constant 0 : i32
    %c0_i32_1 = arith.constant 0 : i32
    return %c0_i32, %c0_i32_0 : i32, i32
  }
  func.func @transform_4(%arg0: i32) -> (i32, i32) {
    %c0_i32 = arith.constant 0 : i32
    %c0_i32_0 = arith.constant 0 : i32
    %c0_i32_1 = arith.constant 0 : i32
    return %c0_i32, %c0_i32_0 : i32, i32
  }
  func.func @transform_5(%arg0: i32) -> (i32, i32) {
    %c0_i32 = arith.constant 0 : i32
    %c0_i32_0 = arith.constant 0 : i32
    %c0_i32_1 = arith.constant 0 : i32
    return %c0_i32, %c0_i32_0 : i32, i32
  }
  func.func @transform_6(%arg0: i32) -> (i32, i32) {
    %c0_i32 = arith.constant 0 : i32
    %c0_i32_0 = arith.constant 0 : i32
    %c0_i32_1 = arith.constant 0 : i32
    return %c0_i32, %c0_i32_0 : i32, i32
  }
  func.func @transform_7(%arg0: i32) -> (i32, i32) {
    %c0_i32 = arith.constant 0 : i32
    %c0_i32_0 = arith.constant 0 : i32
    return %arg0, %c0_i32 : i32, i32
  }
}

module attributes {stable_mosaic.version = 11 : i64} {
  func.func @discriminator_kernel(%arg0: i32, %arg1: memref<16x784xf32, #tpu.memory_space<vmem>>, %arg2: memref<784x512xbf16, #tpu.memory_space<vmem>>, %arg3: memref<1x512xf32, #tpu.memory_space<vmem>>, %arg4: memref<512x256xbf16, #tpu.memory_space<vmem>>, %arg5: memref<1x256xf32, #tpu.memory_space<vmem>>, %arg6: memref<1x256xf32, #tpu.memory_space<vmem>>, %arg7: memref<1x1xf32, #tpu.memory_space<vmem>>, %arg8: memref<16x1xf32, #tpu.memory_space<vmem>>) attributes {dimension_semantics = [#tpu.dimension_semantics<parallel>], iteration_bounds = array<i64: 2>, scalar_prefetch = 0 : i64, scratch_operands = 0 : i64, tpu.core_type = #tpu.core_type<tc>, window_params = [{transform_indices = @transform_0, window_bounds = array<i64: 16, 784>}, {pipeline_mode = #tpu.pipeline_mode<synchronous>, transform_indices = @transform_1, window_bounds = array<i64: 784, 512>}, {pipeline_mode = #tpu.pipeline_mode<synchronous>, transform_indices = @transform_2, window_bounds = array<i64: 1, 512>}, {pipeline_mode = #tpu.pipeline_mode<synchronous>, transform_indices = @transform_3, window_bounds = array<i64: 512, 256>}, {pipeline_mode = #tpu.pipeline_mode<synchronous>, transform_indices = @transform_4, window_bounds = array<i64: 1, 256>}, {pipeline_mode = #tpu.pipeline_mode<synchronous>, transform_indices = @transform_5, window_bounds = array<i64: 1, 256>}, {pipeline_mode = #tpu.pipeline_mode<synchronous>, transform_indices = @transform_6, window_bounds = array<i64: 1, 1>}, {transform_indices = @transform_7, window_bounds = array<i64: 16, 1>}]} {
    %c0 = arith.constant 0 : index
    %c0_0 = arith.constant 0 : index
    %0 = vector.load %arg1[%c0, %c0_0] : memref<16x784xf32, #tpu.memory_space<vmem>>, vector<16x784xf32>
    %1 = arith.truncf %0 : vector<16x784xf32> to vector<16x784xbf16>
    %c0_1 = arith.constant 0 : index
    %c0_2 = arith.constant 0 : index
    %2 = vector.load %arg2[%c0_1, %c0_2] : memref<784x512xbf16, #tpu.memory_space<vmem>>, vector<784x512xbf16>
    %cst = arith.constant dense<0.000000e+00> : vector<16x512xf32>
    %3 = tpu.matmul %1, %2, %cst {dimension_numbers = #tpu.dot_dimension_numbers<[1], [0], [0], [1], [0, 0, 1, 1], [], []>} : vector<16x784xbf16>, vector<784x512xbf16>, vector<16x512xf32> -> vector<16x512xf32>
    %c0_3 = arith.constant 0 : index
    %c0_4 = arith.constant 0 : index
    %4 = vector.load %arg3[%c0_3, %c0_4] : memref<1x512xf32, #tpu.memory_space<vmem>>, vector<1x512xf32>
    %5 = vector.broadcast %4 : vector<1x512xf32> to vector<16x512xf32>
    %6 = arith.addf %3, %5 : vector<16x512xf32>
    %cst_5 = arith.constant 2.000000e-01 : f32
    %7 = vector.broadcast %cst_5 : f32 to vector<16x512xf32>
    %8 = arith.mulf %7, %6 : vector<16x512xf32>
    %9 = arith.maximumf %6, %8 : vector<16x512xf32>
    %10 = arith.truncf %9 : vector<16x512xf32> to vector<16x512xbf16>
    %c0_6 = arith.constant 0 : index
    %c0_7 = arith.constant 0 : index
    %11 = vector.load %arg4[%c0_6, %c0_7] : memref<512x256xbf16, #tpu.memory_space<vmem>>, vector<512x256xbf16>
    %cst_8 = arith.constant dense<0.000000e+00> : vector<16x256xf32>
    %12 = tpu.matmul %10, %11, %cst_8 {dimension_numbers = #tpu.dot_dimension_numbers<[1], [0], [0], [1], [0, 0, 1, 1], [], []>} : vector<16x512xbf16>, vector<512x256xbf16>, vector<16x256xf32> -> vector<16x256xf32>
    %c0_9 = arith.constant 0 : index
    %c0_10 = arith.constant 0 : index
    %13 = vector.load %arg5[%c0_9, %c0_10] : memref<1x256xf32, #tpu.memory_space<vmem>>, vector<1x256xf32>
    %14 = vector.broadcast %13 : vector<1x256xf32> to vector<16x256xf32>
    %15 = arith.addf %12, %14 : vector<16x256xf32>
    %cst_11 = arith.constant 2.000000e-01 : f32
    %16 = vector.broadcast %cst_11 : f32 to vector<16x256xf32>
    %17 = arith.mulf %16, %15 : vector<16x256xf32>
    %18 = arith.maximumf %15, %17 : vector<16x256xf32>
    %c0_12 = arith.constant 0 : index
    %c0_13 = arith.constant 0 : index
    %19 = vector.load %arg6[%c0_12, %c0_13] : memref<1x256xf32, #tpu.memory_space<vmem>>, vector<1x256xf32>
    %20 = vector.broadcast %19 : vector<1x256xf32> to vector<16x256xf32>
    %21 = arith.mulf %18, %20 : vector<16x256xf32>
    %cst_14 = arith.constant dense<0.000000e+00> : vector<16xf32>
    %22 = vector.multi_reduction <add>, %21, %cst_14 [1] : vector<16x256xf32> to vector<16xf32>
    %23 = vector.shape_cast %22 : vector<16xf32> to vector<16x1xf32>
    %c0_15 = arith.constant 0 : index
    %c0_16 = arith.constant 0 : index
    %24 = vector.load %arg7[%c0_15, %c0_16] : memref<1x1xf32, #tpu.memory_space<vmem>>, vector<1x1xf32>
    %25 = vector.broadcast %24 : vector<1x1xf32> to vector<16x1xf32>
    %26 = arith.addf %23, %25 : vector<16x1xf32>
    %27 = arith.negf %26 : vector<16x1xf32>
    %28 = math.exp %27 : vector<16x1xf32>
    %cst_17 = arith.constant 1.000000e+00 : f32
    %29 = vector.broadcast %cst_17 : f32 to vector<16x1xf32>
    %30 = arith.addf %29, %28 : vector<16x1xf32>
    %31 = arith.divf %29, %30 : vector<16x1xf32>
    %c0_18 = arith.constant 0 : index
    %c0_19 = arith.constant 0 : index
    %32 = vector.load %arg8[%c0_18, %c0_19] : memref<16x1xf32, #tpu.memory_space<vmem>>, vector<16x1xf32>
    tpu.vector_store %arg8[%c0_18, %c0_19], %31 {strides = array<i32>} : memref<16x1xf32, #tpu.memory_space<vmem>>, vector<16x1xf32>,
    return
  }
  func.func @transform_0(%arg0: i32) -> (i32, i32) {
    %c0_i32 = arith.constant 0 : i32
    %c0_i32_0 = arith.constant 0 : i32
    return %arg0, %c0_i32 : i32, i32
  }
  func.func @transform_1(%arg0: i32) -> (i32, i32) {
    %c0_i32 = arith.constant 0 : i32
    %c0_i32_0 = arith.constant 0 : i32
    %c0_i32_1 = arith.constant 0 : i32
    return %c0_i32, %c0_i32_0 : i32, i32
  }
  func.func @transform_2(%arg0: i32) -> (i32, i32) {
    %c0_i32 = arith.constant 0 : i32
    %c0_i32_0 = arith.constant 0 : i32
    %c0_i32_1 = arith.constant 0 : i32
    return %c0_i32, %c0_i32_0 : i32, i32
  }
  func.func @transform_3(%arg0: i32) -> (i32, i32) {
    %c0_i32 = arith.constant 0 : i32
    %c0_i32_0 = arith.constant 0 : i32
    %c0_i32_1 = arith.constant 0 : i32
    return %c0_i32, %c0_i32_0 : i32, i32
  }
  func.func @transform_4(%arg0: i32) -> (i32, i32) {
    %c0_i32 = arith.constant 0 : i32
    %c0_i32_0 = arith.constant 0 : i32
    %c0_i32_1 = arith.constant 0 : i32
    return %c0_i32, %c0_i32_0 : i32, i32
  }
  func.func @transform_5(%arg0: i32) -> (i32, i32) {
    %c0_i32 = arith.constant 0 : i32
    %c0_i32_0 = arith.constant 0 : i32
    %c0_i32_1 = arith.constant 0 : i32
    return %c0_i32, %c0_i32_0 : i32, i32
  }
  func.func @transform_6(%arg0: i32) -> (i32, i32) {
    %c0_i32 = arith.constant 0 : i32
    %c0_i32_0 = arith.constant 0 : i32
    %c0_i32_1 = arith.constant 0 : i32
    return %c0_i32, %c0_i32_0 : i32, i32
  }
  func.func @transform_7(%arg0: i32) -> (i32, i32) {
    %c0_i32 = arith.constant 0 : i32
    %c0_i32_0 = arith.constant 0 : i32
    return %arg0, %c0_i32 : i32, i32
  }
}

</mosaic_0001>

<bundles_post_ra>
// kernel: tpu_custom_call.1
= control target key start
LH: loop header
LB: loop body
LE: loop exit
PB: predicated region body
PF: predicated region fallthrough
CT: control target
= control target key end

     0   :  { %s3768_s0 = inlined_call_operand.hbm [shape: f32[32,784], index: 0, kind: input, shape index: {}]   ;;  %s3769_s1 = inlined_call_operand.hbm [shape: bf16[784,512], index: 1, kind: input, shape index: {}]   ;;  %s3770_s2 = inlined_call_operand.vmem [shape: f32[1,512], index: 2, kind: input, shape index: {}]   ;;  %s3771_s3 = inlined_call_operand.hbm [shape: bf16[512,256], index: 3, kind: input, shape index: {}]   ;;  %s3772_s4 = inlined_call_operand.vmem [shape: f32[1,256], index: 4, kind: input, shape index: {}]   ;;  %s3773_s5 = inlined_call_operand.vmem [shape: f32[1,256], index: 5, kind: input, shape index: {}]   ;;  %s3774_s6 = inlined_call_operand.<no memory space> [shape: f32[1,1], index: 6, kind: input, shape index: {}]   ;;  %s3775_s7 = inlined_call_operand.vmem [shape: f32[32,1], index: 7, kind: output, shape index: {}]  }
   0x1   :  { %v12_v0 = vstv %s3774_s6 }
   0x2   :  { %13 = vst [vmem:[#allocation2] sm:$0x1] %v12_v0 }
   0x3   :  { %14 = vsyncpa [#allocation4], 0 }
   0x4   :  { %16 = vsyncpa [#allocation4 + $0x1], 0 }
   0x5   :  { %17 = vsyncpa [#allocation6], 0  ;;  %s3511_s26 = smov 0   ;;  %s3513_s27 = smov 0  }
   0x6   :  { %s3515_s28 = smov 0   ;;  %s3517_s29 = smov 0  }
   0x7 LB: > { %s2543_s6 = sadd.s32 4294967295, %s3456_s29   ;;  %p43_p0 = scmp.ne.s32.totalorder %s3448_s27, %s3444_s26  ;;  %s3456_s29 = sphi %s3517_s29, %s3791_s29   ;;  %s3452_s28 = sphi %s3515_s28, %s3790_s28   ;;  %s3448_s27 = sphi %s3513_s27, %s3789_s27   ;;  %s3444_s26 = sphi %s3511_s26, %s3788_s26  }
   0x8   : > { %p3533_p1 = scmp.eq.s32.totalorder %s2543_s6, 0  ;;  %p2545_p2 = scmp.ge.s32.totalorder %s3456_s29, 1 }
   0x9   : > { %p206_p3 = scmp.lt.s32.totalorder %s3456_s29, 3  ;;  %s3458_s10 = smov [#allocation5]  }
   0xa   : > { %s3780_s30 = scalar_select %p3533_p1, 1, 0 }
   0xb   : > { %p3541_p4 = por %p3533_p1, %p43_p0  ;;  %p3545_p5 = pnand %p2545_p2, %p206_p3 }
   0xc   : > { %s218_s11 = sshll.u32 %s3458_s10, 4  ;;  %s3459_s13 = smov [#allocation7]   ;;  %s219_s11 = int_to_ptr.vmem [resolvable:$true] %s218_s11 }
   0xd   : > { %s3781_s8 = scalar_select %p3541_p4, 1, 0 }
   0xe   : > { %s3782_s9 = scalar_select %p3545_p5, 1, 0 }
   0xf   : > { %p2877_p6 = pneg %p3545_p5  ;;  %s234_s14 = sshll.u32 %s3459_s13, 4  ;;  %s3557_s14 = int_to_ptr.vmem [resolvable:$true] %s234_s14 }
  0x10   : > { %s3332_s17 = scalar_lea.hbm %s3769_s1, 25088 }
  0x11   : > { %p3553_p7 = pnand %p2877_p6, %p3533_p1  ;;  %p3333_p8 = scmp.ne.s32.totalorder %s3769_s1, %s3332_s17 }
  0x12   : > { %p3339_p12 = scmp.lt.u32.totalorder %s3332_s17, %s3769_s1 }
  0x13   : > { %p3334_p9 = pneg %p3553_p7 }
  0x15   : > { %p3335_p10 = pnand %p3334_p9, %p3333_p8 }
  0x17   : > { %p3336_p11 = pneg %p3335_p10 }
  0x19   : > { %p3341_p13 = pnand %p3339_p12, %p3336_p11 }
  0x1b   : > { %3344 = shalt.err (!%p3341_p13)
}
  0x1c   : > { %s3345_s22 = scalar_lea.vmem %s219_s11, 25088  ;;  %p3353_p6 = scmp.lt.s32.totalorder %s219_s11, %s219_s11 }
  0x1d   : > { %p3346_p0 = scmp.ne.s32.totalorder %s219_s11, %s3345_s22  ;;  %p3354_p1 = scmp.lt.s32.totalorder %s3345_s22, %s3345_s22 }
  0x1f   : > { %p3348_p2 = pnand %p3346_p0, %p3334_p9  ;;  %p3355_p4 = por %p3354_p1, %p3353_p6 }
  0x21   : > { %p3349_p3 = pneg %p3348_p2 }
  0x23   : > { %p3356_p5 = pnand %p3355_p4, %p3349_p3 }
  0x25   : > { %3359 = shalt.err (!%p3356_p5)
}
  0x26   : > { %s3460_s23 = smov 256   ;;  %s3461_s24 = smov 16  }
  0x27   : > { %2880 = dma.hbm_to_vmem [thread:$0]  (!%p3553_p7), %s3769_s1, 25088, %s219_s11, [#allocation6], %s3460_s23, %s3460_s23, %s3461_s24  }
  0x28   : > { %s3360_s15 = scalar_lea.hbm %s3771_s3, 8192 }
  0x29   : > { %p3361_p8 = scmp.ne.s32.totalorder %s3771_s3, %s3360_s15  ;;  %p3367_p5 = scmp.lt.u32.totalorder %s3360_s15, %s3771_s3 }
  0x2b   : > { %p3363_p1 = pnand %p3361_p8, %p3334_p9 }
  0x2d   : > { %p3364_p4 = pneg %p3363_p1 }
  0x2f   : > { %p3369_p10 = pnand %p3367_p5, %p3364_p4 }
  0x31   : > { %3372 = shalt.err (!%p3369_p10)
}
  0x32   : > { %s3373_s11 = scalar_lea.vmem %s3557_s14, 8192  ;;  %p3381_p0 = scmp.lt.s32.totalorder %s3557_s14, %s3557_s14 }
  0x33   : > { %p3374_p11 = scmp.ne.s32.totalorder %s3557_s14, %s3373_s11  ;;  %p3382_p2 = scmp.lt.s32.totalorder %s3373_s11, %s3373_s11 }
  0x35   : > { %p3376_p12 = pnand %p3374_p11, %p3334_p9  ;;  %p3383_p3 = por %p3382_p2, %p3381_p0 }
  0x37   : > { %p3377_p13 = pneg %p3376_p12 }
  0x39   : > { %p3384_p6 = pnand %p3383_p3, %p3377_p13 }
  0x3b   : > { %3387 = shalt.err (!%p3384_p6)
}
  0x3c   : > { %s3462_s20 = smov 128   ;;  %s3463_s21 = smov 8  }
  0x3d   : > { %2883 = dma.hbm_to_vmem [thread:$0]  (!%p3553_p7), %s3771_s3, 8192, %s3557_s14, [#allocation6], %s3462_s20, %s3462_s20, %s3463_s21  }
  0x3e   : > { %s3607_s24 = sadd.s32 1, %s3456_s29   ;;  %s30_s26 = sadd.s32 1, %s3452_s28 }
  0x3f   : > { %s27_s25 = ssub.s32 %s3456_s29, %s3607_s24  ;;  %p37_p8 = scmp.ne.s32.totalorder %s3452_s28, %s3448_s27 }
  0x40   : > { %p28_p9 = scmp.eq.s32.totalorder %s27_s25, 0  ;;  %p38_p1 = scmp.eq.s32.totalorder %s3456_s29, 0 }
  0x41   : > { %p2890_p5 = scmp.lt.s32.totalorder %s3456_s29, 2  ;;  %s257_s13 = sand.u32 1, %s3452_s28  }
  0x42   : > { %s3616_s10 = scalar_select %p28_p9, %s3452_s28, %s30_s26  }
  0x43   : > { %p39_p4 = por %p38_p1, %p37_p8  ;;  %s2865_s15 = smul.u32 1792, %s3456_s29 }
  0x44   : > { %s2864_s16 = smul.u32 112, %s257_s13  ;;  %s3632_s20 = scalar_lea.sflag [#allocation4], %s257_s13 }
  0x45   : > { %s3624_s18 = scalar_lea.hbm %s3768_s0, %s2865_s15  ;;  %p3626_p7 = pnand %p2890_p5, %p39_p4 }
  0x46   : > { %s261_s19 = scalar_lea.vmem [#allocation3], %s2864_s16  ;;  %s3388_s21 = scalar_lea.hbm %s3624_s18, 1792 }
  0x47   : > { %s269_s11 = sshll.u32 %s261_s19, 4  ;;  %p3389_p10 = scmp.ne.s32.totalorder %s3624_s18, %s3388_s21  ;;  %s3630_s11 = int_to_ptr.vmem [resolvable:$true] %s269_s11 }
  0x48   : > { %p3390_p11 = pneg %p3626_p7  ;;  %s3393_s25 = scalar_lea.hbm %s3768_s0, 3584 }
  0x49   : > { %p3394_p0 = scmp.lt.u32.totalorder %s3624_s18, %s3768_s0  ;;  %p3395_p2 = scmp.lt.u32.totalorder %s3393_s25, %s3388_s21 }
  0x4a   : > { %p3391_p12 = pnand %p3390_p11, %p3389_p10  ;;  %p3397_p6 = scmp.lt.u32.totalorder %s3388_s21, %s3624_s18 }
  0x4b   : > { %p3396_p3 = por %p3395_p2, %p3394_p0 }
  0x4c   : > { %p3392_p13 = pneg %p3391_p12 }
  0x4d   : > { %p3398_p9 = por %p3397_p6, %p3396_p3 }
  0x4f   : > { %p3399_p8 = pnand %p3398_p9, %p3392_p13 }
  0x51   : > { %3402 = shalt.err (!%p3399_p8)
}
  0x52   : > { %s3403_s13 = scalar_lea.vmem %s3630_s11, 1792  ;;  %s3464_s16 = smov [#allocation3]  }
  0x53   : > { %p3404_p1 = scmp.ne.s32.totalorder %s3630_s11, %s3403_s13  ;;  %s3408_s12 = sshll.u32 %s3464_s16, 4  ;;  %s3409_s12 = int_to_ptr.vmem [resolvable:$false] %s3408_s12 }
  0x54   : > { %s3410_s17 = scalar_lea.vmem %s3409_s12, 3584  ;;  %p3411_p10 = scmp.lt.s32.totalorder %s3630_s11, %s3409_s12 }
  0x55   : > { %p3406_p4 = pnand %p3404_p1, %p3390_p11  ;;  %p3412_p12 = scmp.lt.s32.totalorder %s3410_s17, %s3403_s13 }
  0x57   : > { %p3407_p5 = pneg %p3406_p4  ;;  %p3413_p0 = por %p3412_p12, %p3411_p10 }
  0x59   : > { %p3414_p2 = pnand %p3413_p0, %p3407_p5 }
  0x5b   : > { %3417 = shalt.err (!%p3414_p2)
}
  0x5c   : > { %s3465_s19 = smov 896   ;;  %s3466_s21 = smov 56  }
  0x5d   : > { %2887 = dma.hbm_to_vmem [thread:$0]  (!%p3626_p7), %s3624_s18, 1792, %s3630_s11, %s3632_s20, %s3465_s19, %s3465_s19, %s3466_s21  }
  0x5e   : > { %p3785_p11 = scmp.ne.s32.totalorder %s3782_s9, 0 }
  0x5f   : > { %s283_s22 = sand.u32 (!%p3785_p11), 1, %s3448_s27   ;;  %p3786_p13 = scmp.ne.s32.totalorder (!%p3785_p11), %s3781_s8, 0 }
  0x60   : > { %281 = sbr.rel (%p3785_p11) target bundleno = 998 (0x3e6), region = 48  ;;  %s284_s25 = scalar_lea.sflag (!%p3785_p11), [#allocation4], %s283_s22 }
  0x61   : > { %s2866_s23 = smul.u32 (!%p3785_p11), 112, %s283_s22 }
  0x63   : > { %s3663_s26 = scalar_lea.vmem (!%p3785_p11), [#allocation3], %s2866_s23 }
  0x67   : > { %3435 = dma.done.wait (%p3786_p13), %s284_s25, 1792  }
  0x68   : > { %3437 = vsyncadd (%p3786_p13), %s284_s25, 4294965504  ;;  %p3787_p3 = scmp.ne.s32.totalorder %s3780_s30, 0 }
  0x6a   : > { %3439 = dma.done.wait (%p3787_p3), [#allocation6], 33280  }
  0x6b   : > { %3441 = vsyncadd (%p3787_p3), [#allocation6], 4294934016  ;;  %v2934_v1 = vld [vmem:[#allocation5 + $0x4] ss:$16 sps:$4 sm:$0xff]   ;;  %v2938_v3 = vld [vmem:[#allocation5] ss:$16 sps:$4 sm:$0xff]  }
  0x6c   : > { %v2936_v2 = vld [vmem:[#allocation5 + $0x204] ss:$16 sps:$4 sm:$0xff]   ;;  %1557 = vmatprep.subr.bf16.mxu1 %v2934_v1  ;;  %v2939_v4 = vld [vmem:[#allocation5 + $0x200] ss:$16 sps:$4 sm:$0xff]   ;;  %v335_v47 = vld [vmem:[%s3663_s26 + $0x8] sm:$0xff]  ;;  %vm1553_vm0 = vcmask 130048  }
  0x6d   : > { %1600 = vmatprep.subr.bf16.mxu0 %v2936_v2  ;;  %v2940_v5 = vld [vmem:[#allocation5 + $0x24] ss:$16 sps:$4 sm:$0xff]   ;;  %1558 = vmatpush1.bf16.msra.mxu1 %v2938_v3  ;;  %v2944_v7 = vld [vmem:[#allocation5 + $0x20] ss:$16 sps:$4 sm:$0xff]   ;;  %v337_v52 = vld [vmem:[%s3663_s26 + $0x18] sm:$0xff]  ;;  %s2555_s20 = sshll.u32 %s2543_s6, 1 }
  0x6e   : > { %1601 = vmatpush1.bf16.msra.mxu0 %v2939_v4  ;;  %v2942_v6 = vld [vmem:[#allocation5 + $0x224] ss:$16 sps:$4 sm:$0xff]   ;;  %1559 = vmatprep.subr.bf16.mxu1 %v2940_v5  ;;  %v2945_v8 = vld [vmem:[#allocation5 + $0x220] ss:$16 sps:$4 sm:$0xff]   ;;  %p328_p7 = scmp.lt.s32.totalorder %s2555_s20, 3  ;;  %vm2454_vm1 = vcmask 7168  }
  0x6f   : > { %1602 = vmatprep.subr.bf16.mxu0 %v2942_v6  ;;  %v2946_v9 = vld [vmem:[#allocation5 + $0x44] ss:$16 sps:$4 sm:$0xff]   ;;  %v2950_v11 = vld [vmem:[#allocation5 + $0x40] ss:$16 sps:$4 sm:$0xff]  }
  0x70   : > { %v2948_v10 = vld [vmem:[#allocation5 + $0x244] ss:$16 sps:$4 sm:$0xff]   ;;  %v2951_v12 = vld [vmem:[#allocation5 + $0x240] ss:$16 sps:$4 sm:$0xff]   ;;  %s3793_s20 = smov (!%p328_p7, %s2555_s20), 3 }
  0x71   : > { %1560 = vmatpush1.bf16.msra.mxu1 %v2944_v7  ;;  %v2952_v13 = vld [vmem:[#allocation5 + $0x64] ss:$16 sps:$4 sm:$0xff]   ;;  %v2956_v15 = vld [vmem:[#allocation5 + $0x60] ss:$16 sps:$4 sm:$0xff]   ;;  %s2556_s15 = sshll.u32 %s3793_s20, 3 }
  0x72   : > { %1603 = vmatpush1.bf16.msra.mxu0 %v2945_v8  ;;  %1561 = vmatprep.subr.bf16.mxu1 %v2946_v9  ;;  %v2954_v14 = vld [vmem:[#allocation5 + $0x264] ss:$16 sps:$4 sm:$0xff]   ;;  %v2957_v16 = vld [vmem:[#allocation5 + $0x260] ss:$16 sps:$4 sm:$0xff]   ;;  %v341_v8 = vld [vmem:[%s3663_s26 + $0x38] sm:$0xff]  ;;  %s331_s12 = scalar_lea.vmem %s3775_s7, %s2556_s15 }
  0x73   : > { %1604 = vmatprep.subr.bf16.mxu0 %v2948_v10  ;;  %v2958_v17 = vld [vmem:[#allocation5 + $0x84] ss:$16 sps:$4 sm:$0xff]   ;;  %v2962_v19 = vld [vmem:[#allocation5 + $0x80] ss:$16 sps:$4 sm:$0xff]  }
  0x74   : > { %v2960_v18 = vld [vmem:[#allocation5 + $0x284] ss:$16 sps:$4 sm:$0xff]   ;;  %v2963_v20 = vld [vmem:[#allocation5 + $0x280] ss:$16 sps:$4 sm:$0xff]  }
  0x75   : > { %1562 = vmatpush1.bf16.msra.mxu1 %v2950_v11  ;;  %v2964_v21 = vld [vmem:[#allocation5 + $0xa4] ss:$16 sps:$4 sm:$0xff]   ;;  %v2968_v23 = vld [vmem:[#allocation5 + $0xa0] ss:$16 sps:$4 sm:$0xff]   ;;  %v343_v11 = vld [vmem:[%s3663_s26 + $0x48] sm:$0xff] }
  0x76   : > { %1605 = vmatpush1.bf16.msra.mxu0 %v2951_v12  ;;  %1563 = vmatprep.subr.bf16.mxu1 %v2952_v13  ;;  %v2966_v22 = vld [vmem:[#allocation5 + $0x2a4] ss:$16 sps:$4 sm:$0xff]   ;;  %v2969_v24 = vld [vmem:[#allocation5 + $0x2a0] ss:$16 sps:$4 sm:$0xff]   ;;  %v3035_v12 = vld [vmem:[#allocation5 + $0xc] ss:$16 sps:$4 sm:$0xff]  }
  0x77   : > { %1606 = vmatprep.subr.bf16.mxu0 %v2954_v14  ;;  %v2970_v25 = vld [vmem:[#allocation5 + $0xc4] ss:$16 sps:$4 sm:$0xff]   ;;  %v2974_v27 = vld [vmem:[#allocation5 + $0xc0] ss:$16 sps:$4 sm:$0xff]  }
  0x78   : > { %v2972_v26 = vld [vmem:[#allocation5 + $0x2c4] ss:$16 sps:$4 sm:$0xff]   ;;  %v2975_v28 = vld [vmem:[#allocation5 + $0x2c0] ss:$16 sps:$4 sm:$0xff]  }
  0x79   : > { %1564 = vmatpush1.bf16.msra.mxu1 %v2956_v15  ;;  %v2976_v29 = vld [vmem:[#allocation5 + $0xe4] ss:$16 sps:$4 sm:$0xff]   ;;  %v2980_v31 = vld [vmem:[#allocation5 + $0xe0] ss:$16 sps:$4 sm:$0xff]   ;;  %v3033_v15 = vld [vmem:[#allocation5 + $0x8] ss:$16 sps:$4 sm:$0xff]  }
  0x7a   : > { %1607 = vmatpush1.bf16.msra.mxu0 %v2957_v16  ;;  %1565 = vmatprep.subr.bf16.mxu1 %v2958_v17  ;;  %v2978_v30 = vld [vmem:[#allocation5 + $0x2e4] ss:$16 sps:$4 sm:$0xff]   ;;  %v2981_v32 = vld [vmem:[#allocation5 + $0x2e0] ss:$16 sps:$4 sm:$0xff]  }
  0x7b   : > { %1608 = vmatprep.subr.bf16.mxu0 %v2960_v18  ;;  %v2982_v33 = vld [vmem:[#allocation5 + $0x104] ss:$16 sps:$4 sm:$0xff]   ;;  %v2986_v35 = vld [vmem:[#allocation5 + $0x100] ss:$16 sps:$4 sm:$0xff]   ;;  %v3041_v18 = vld [vmem:[#allocation5 + $0x2c] ss:$16 sps:$4 sm:$0xff]  }
  0x7c   : > { %v2984_v34 = vld [vmem:[#allocation5 + $0x304] ss:$16 sps:$4 sm:$0xff]   ;;  %v2987_v36 = vld [vmem:[#allocation5 + $0x300] ss:$16 sps:$4 sm:$0xff]  }
  0x7d   : > { %1566 = vmatpush1.bf16.msra.mxu1 %v2962_v19  ;;  %v2988_v37 = vld [vmem:[#allocation5 + $0x124] ss:$16 sps:$4 sm:$0xff]   ;;  %v2992_v39 = vld [vmem:[#allocation5 + $0x120] ss:$16 sps:$4 sm:$0xff]  }
  0x7e   : > { %1609 = vmatpush1.bf16.msra.mxu0 %v2963_v20  ;;  %1567 = vmatprep.subr.bf16.mxu1 %v2964_v21  ;;  %v2990_v38 = vld [vmem:[#allocation5 + $0x324] ss:$16 sps:$4 sm:$0xff]   ;;  %v2993_v40 = vld [vmem:[#allocation5 + $0x320] ss:$16 sps:$4 sm:$0xff]   ;;  %v3039_v20 = vld [vmem:[#allocation5 + $0x28] ss:$16 sps:$4 sm:$0xff]  }
  0x7f   : > { %1610 = vmatprep.subr.bf16.mxu0 %v2966_v22  ;;  %v2994_v41 = vld [vmem:[#allocation5 + $0x144] ss:$16 sps:$4 sm:$0xff]   ;;  %v2998_v43 = vld [vmem:[#allocation5 + $0x140] ss:$16 sps:$4 sm:$0xff]   ;;  %v3047_v22 = vld [vmem:[#allocation5 + $0x4c] ss:$16 sps:$4 sm:$0xff]  }
  0x80   : > { %v2996_v42 = vld [vmem:[#allocation5 + $0x344] ss:$16 sps:$4 sm:$0xff]   ;;  %v2999_v44 = vld [vmem:[#allocation5 + $0x340] ss:$16 sps:$4 sm:$0xff]  }
  0x81   : > { %1568 = vmatpush1.bf16.msra.mxu1 %v2968_v23  ;;  %v3000_v45 = vld [vmem:[#allocation5 + $0x164] ss:$16 sps:$4 sm:$0xff]   ;;  %v3004_v48 = vld [vmem:[#allocation5 + $0x160] ss:$16 sps:$4 sm:$0xff]  }
  0x82   : > { %1611 = vmatpush1.bf16.msra.mxu0 %v2969_v24  ;;  %1569 = vmatprep.subr.bf16.mxu1 %v2970_v25  ;;  %v3002_v46 = vld [vmem:[#allocation5 + $0x364] ss:$16 sps:$4 sm:$0xff]   ;;  %v3005_v49 = vld [vmem:[#allocation5 + $0x360] ss:$16 sps:$4 sm:$0xff]   ;;  %v3045_v24 = vld [vmem:[#allocation5 + $0x48] ss:$16 sps:$4 sm:$0xff]  }
  0x83   : > { %1612 = vmatprep.subr.bf16.mxu0 %v2972_v26  ;;  %v342_v50 = vld [vmem:[%s3663_s26 + $0x40] sm:$0xff]  ;;  %v344_v53 = vld [vmem:[%s3663_s26 + $0x50] sm:$0xff]  ;;  %v3053_v26 = vld [vmem:[#allocation5 + $0x6c] ss:$16 sps:$4 sm:$0xff]  }
  0x84   : > { %v3675_v51 = vpack.c.bf16 %v342_v50, %v335_v47  ;;  %v3006_v54 = vld [vmem:[#allocation5 + $0x184] ss:$16 sps:$4 sm:$0xff]   ;;  %v3679_v56 = vpack.c.bf16 %v344_v53, %v337_v52  ;;  %v3010_v57 = vld [vmem:[#allocation5 + $0x180] ss:$16 sps:$4 sm:$0xff]   ;;  %v3075_v47 = vld [vmem:[#allocation5 + $0xe8] ss:$16 sps:$4 sm:$0xff]  }
  0x85   : > { %1570 = vmatpush1.bf16.msra.mxu1 %v2974_v27  ;;  %v3008_v55 = vld [vmem:[#allocation5 + $0x384] ss:$16 sps:$4 sm:$0xff]   ;;  %v3011_v58 = vld [vmem:[#allocation5 + $0x380] ss:$16 sps:$4 sm:$0xff]   ;;  %v3089_v53 = vld [vmem:[#allocation5 + $0x12c] ss:$16 sps:$4 sm:$0xff]  }
  0x86   : > { %1613 = vmatpush1.bf16.msra.mxu0 %v2975_v28  ;;  %1571 = vmatprep.subr.bf16.mxu1 %v2976_v29  ;;  %v3012_v59 = vld [vmem:[#allocation5 + $0x1a4] ss:$16 sps:$4 sm:$0xff]   ;;  %v3016_v61 = vld [vmem:[#allocation5 + $0x1a0] ss:$16 sps:$4 sm:$0xff]   ;;  %v3051_v28 = vld [vmem:[#allocation5 + $0x68] ss:$16 sps:$4 sm:$0xff]  }
  0x87   : > { %1614 = vmatprep.subr.bf16.mxu0 %v2978_v30  ;;  %1589 = vmatprep.mubr.bf16.mxu1 %v3675_v51  ;;  %v3014_v60 = vld [vmem:[#allocation5 + $0x3a4] ss:$16 sps:$4 sm:$0xff]   ;;  %v3017_v62 = vld [vmem:[#allocation5 + $0x3a0] ss:$16 sps:$4 sm:$0xff]   ;;  %v3059_v30 = vld [vmem:[#allocation5 + $0x8c] ss:$16 sps:$4 sm:$0xff]  }
  0x88   : > { %1632 = vmatprep.mubr.bf16.mxu0 %v3679_v56  ;;  %v3018_v63 = vld [vmem:[#allocation5 + $0x1c4] ss:$16 sps:$4 sm:$0xff]   ;;  %v3022_v1 = vld [vmem:[#allocation5 + $0x1c0] ss:$16 sps:$4 sm:$0xff]  }
  0x89   : > { %1572 = vmatpush1.bf16.msra.mxu1 %v2980_v31  ;;  %v3020_v0 = vld [vmem:[#allocation5 + $0x3c4] ss:$16 sps:$4 sm:$0xff]   ;;  %v3023_v2 = vld [vmem:[#allocation5 + $0x3c0] ss:$16 sps:$4 sm:$0xff]  }
  0x8a   : > { %1615 = vmatpush1.bf16.msra.mxu0 %v2981_v32  ;;  %1573 = vmatprep.subr.bf16.mxu1 %v2982_v33  ;;  %v3024_v3 = vld [vmem:[#allocation5 + $0x1e4] ss:$16 sps:$4 sm:$0xff]   ;;  %v3028_v5 = vld [vmem:[#allocation5 + $0x1e0] ss:$16 sps:$4 sm:$0xff]   ;;  %v3057_v32 = vld [vmem:[#allocation5 + $0x88] ss:$16 sps:$4 sm:$0xff]  }
  0x8b   : > { %1616 = vmatprep.subr.bf16.mxu0 %v2984_v34  ;;  %v3026_v4 = vld [vmem:[#allocation5 + $0x3e4] ss:$16 sps:$4 sm:$0xff]   ;;  %v3029_v6 = vld [vmem:[#allocation5 + $0x3e0] ss:$16 sps:$4 sm:$0xff]   ;;  %v3065_v34 = vld [vmem:[#allocation5 + $0xac] ss:$16 sps:$4 sm:$0xff]  }
  0x8c   : > { %v334_v7 = vld [vmem:[%s3663_s26] sm:$0xff]  ;;  %v336_v10 = vld [vmem:[%s3663_s26 + $0x10] sm:$0xff] }
  0x8d   : > { %1574 = vmatpush1.bf16.msra.mxu1 %v2986_v35  ;;  %v3032_v9 = vld [vmem:[#allocation5 + $0x404] ss:$16 sps:$4 sm:$0xff]   ;;  %v3687_v13 = vpack.c.bf16 %v341_v8, %v334_v7  ;;  %v3030_v14 = vld [vmem:[#allocation5 + $0x400] ss:$16 sps:$4 sm:$0xff]   ;;  %v3689_v16 = vpack.c.bf16 %v343_v11, %v336_v10  ;;  %v3111_v8 = vld [vmem:[#allocation5 + $0x1a8] ss:$16 sps:$4 sm:$0xff]  }
  0x8e   : > { %1617 = vmatpush1.bf16.msra.mxu0 %v2987_v36  ;;  %1575 = vmatprep.subr.bf16.mxu1 %v2988_v37  ;;  %v3038_v17 = vld [vmem:[#allocation5 + $0x424] ss:$16 sps:$4 sm:$0xff]   ;;  %v3036_v19 = vld [vmem:[#allocation5 + $0x420] ss:$16 sps:$4 sm:$0xff]   ;;  %v3063_v36 = vld [vmem:[#allocation5 + $0xa8] ss:$16 sps:$4 sm:$0xff]  }
  0x8f   : > { %1618 = vmatprep.subr.bf16.mxu0 %v2990_v38  ;;  %v3044_v21 = vld [vmem:[#allocation5 + $0x444] ss:$16 sps:$4 sm:$0xff]   ;;  %v3042_v23 = vld [vmem:[#allocation5 + $0x440] ss:$16 sps:$4 sm:$0xff]   ;;  %v3071_v38 = vld [vmem:[#allocation5 + $0xcc] ss:$16 sps:$4 sm:$0xff]  }
  0x90   : > { %v3050_v25 = vld [vmem:[#allocation5 + $0x464] ss:$16 sps:$4 sm:$0xff]   ;;  %v3048_v27 = vld [vmem:[#allocation5 + $0x460] ss:$16 sps:$4 sm:$0xff]   ;;  %v3119_v10 = vld [vmem:[#allocation5 + $0x1cc] ss:$16 sps:$4 sm:$0xff]  }
  0x91   : > { %1576 = vmatpush1.bf16.msra.mxu1 %v2992_v39  ;;  %v3056_v29 = vld [vmem:[#allocation5 + $0x484] ss:$16 sps:$4 sm:$0xff]   ;;  %v3054_v31 = vld [vmem:[#allocation5 + $0x480] ss:$16 sps:$4 sm:$0xff]  }
  0x92   : > { %1619 = vmatpush1.bf16.msra.mxu0 %v2993_v40  ;;  %1577 = vmatprep.subr.bf16.mxu1 %v2994_v41  ;;  %v3062_v33 = vld [vmem:[#allocation5 + $0x4a4] ss:$16 sps:$4 sm:$0xff]   ;;  %v3060_v35 = vld [vmem:[#allocation5 + $0x4a0] ss:$16 sps:$4 sm:$0xff]   ;;  %v3069_v40 = vld [vmem:[#allocation5 + $0xc8] ss:$16 sps:$4 sm:$0xff]  }
  0x93   : > { %1620 = vmatprep.subr.bf16.mxu0 %v2996_v42  ;;  %v3068_v37 = vld [vmem:[#allocation5 + $0x4c4] ss:$16 sps:$4 sm:$0xff]   ;;  %v3066_v39 = vld [vmem:[#allocation5 + $0x4c0] ss:$16 sps:$4 sm:$0xff]   ;;  %v339_v42 = vld [vmem:[%s3663_s26 + $0x28] sm:$0xff] }
  0x94   : > { %v3074_v41 = vld [vmem:[#allocation5 + $0x4e4] ss:$16 sps:$4 sm:$0xff]   ;;  %v3078_v50 = vld [vmem:[#allocation5 + $0x500] ss:$16 sps:$4 sm:$0xff]  }
  0x95   : > { %1578 = vmatpush1.bf16.msra.mxu1 %v2998_v43  ;;  %v346_v43 = vld [vmem:[%s3663_s26 + $0x60] sm:$0xff] }
  0x96   : > { %1621 = vmatpush1.bf16.msra.mxu0 %v2999_v44  ;;  %1579 = vmatprep.subr.bf16.mxu1 %v3000_v45  ;;  %v3077_v44 = vld [vmem:[#allocation5 + $0xec] ss:$16 sps:$4 sm:$0xff]   ;;  %v3696_v45 = vpack.c.bf16 %v346_v43, %v339_v42  ;;  %v3086_v52 = vld [vmem:[#allocation5 + $0x524] ss:$16 sps:$4 sm:$0xff]   ;;  %v3108_v7 = vld [vmem:[#allocation5 + $0x5a0] ss:$16 sps:$4 sm:$0xff]  }
  0x97   : > { %1622 = vmatprep.subr.bf16.mxu0 %v3002_v46  ;;  %v3072_v46 = vld [vmem:[#allocation5 + $0x4e0] ss:$16 sps:$4 sm:$0xff]   ;;  %v3230_v42 = vld [vmem:[#allocation7 + $0x4] ss:$8 sps:$4 sm:$0xff]   ;;  %v3233_v43 = vld [vmem:[#allocation7 + $0x14] ss:$8 sps:$4 sm:$0xff]  }
  0x98   : > { %v3114_v11 = vld [vmem:[#allocation5 + $0x5c0] ss:$16 sps:$4 sm:$0xff]  }
  0x99   : > { %1580 = vmatpush1.bf16.msra.mxu1 %v3004_v48  ;;  %v3080_v48 = vld [vmem:[#allocation5 + $0x504] ss:$16 sps:$4 sm:$0xff]  }
  0x9a   : > { %1623 = vmatpush1.bf16.msra.mxu0 %v3005_v49  ;;  %1581 = vmatprep.subr.bf16.mxu1 %v3006_v54  ;;  %v3083_v49 = vld [vmem:[#allocation5 + $0x10c] ss:$16 sps:$4 sm:$0xff]   ;;  %v3084_v54 = vld [vmem:[#allocation5 + $0x520] ss:$16 sps:$4 sm:$0xff]  }
  0x9b   : > { %1624 = vmatprep.subr.bf16.mxu0 %v3008_v55  ;;  %v3087_v55 = vld [vmem:[#allocation5 + $0x128] ss:$16 sps:$4 sm:$0xff]  }
  0x9d   : > { %1582 = vmatpush1.bf16.msra.mxu1 %v3010_v57  ;;  %v3092_v57 = vld [vmem:[#allocation5 + $0x544] ss:$16 sps:$4 sm:$0xff]  }
  0x9e   : > { %1625 = vmatpush1.bf16.msra.mxu0 %v3011_v58  ;;  %1583 = vmatprep.subr.bf16.mxu1 %v3012_v59  ;;  %v3095_v58 = vld [vmem:[#allocation5 + $0x14c] ss:$16 sps:$4 sm:$0xff]   ;;  %v3090_v59 = vld [vmem:[#allocation5 + $0x540] ss:$16 sps:$4 sm:$0xff]  }
  0x9f   : > { %1626 = vmatprep.subr.bf16.mxu0 %v3014_v60  ;;  %v3093_v60 = vld [vmem:[#allocation5 + $0x148] ss:$16 sps:$4 sm:$0xff]  }
  0xa1   : > { %1584 = vmatpush1.bf16.msra.mxu1 %v3016_v61  ;;  %v3098_v61 = vld [vmem:[#allocation5 + $0x564] ss:$16 sps:$4 sm:$0xff]  }
  0xa2   : > { %1627 = vmatpush1.bf16.msra.mxu0 %v3017_v62  ;;  %1585 = vmatprep.subr.bf16.mxu1 %v3018_v63  ;;  %v3101_v62 = vld [vmem:[#allocation5 + $0x16c] ss:$16 sps:$4 sm:$0xff]   ;;  %v3096_v63 = vld [vmem:[#allocation5 + $0x560] ss:$16 sps:$4 sm:$0xff]  }
  0xa3   : > { %1628 = vmatprep.subr.bf16.mxu0 %v3020_v0  ;;  %v3099_v0 = vld [vmem:[#allocation5 + $0x168] ss:$16 sps:$4 sm:$0xff]  }
  0xa5   : > { %1586 = vmatpush1.bf16.msra.mxu1 %v3022_v1  ;;  %v3104_v1 = vld [vmem:[#allocation5 + $0x584] ss:$16 sps:$4 sm:$0xff]  }
  0xa6   : > { %1629 = vmatpush1.bf16.msra.mxu0 %v3023_v2  ;;  %1587 = vmatprep.subr.bf16.mxu1 %v3024_v3  ;;  %v3107_v2 = vld [vmem:[#allocation5 + $0x18c] ss:$16 sps:$4 sm:$0xff]   ;;  %v3102_v3 = vld [vmem:[#allocation5 + $0x580] ss:$16 sps:$4 sm:$0xff]  }
  0xa7   : > { %1630 = vmatprep.subr.bf16.mxu0 %v3026_v4  ;;  %v3105_v4 = vld [vmem:[#allocation5 + $0x188] ss:$16 sps:$4 sm:$0xff]  }
  0xa9   : > { %1588 = vmatpush1.bf16.msra.mxu1 %v3028_v5  ;;  %v3110_v5 = vld [vmem:[#allocation5 + $0x5a4] ss:$16 sps:$4 sm:$0xff]  }
  0xaa   : > { %1631 = vmatpush1.bf16.msra.mxu0 %v3029_v6  ;;  %1729 = vmatprep.subr.bf16.mxu1 %v3035_v12  ;;  %v3113_v6 = vld [vmem:[#allocation5 + $0x1ac] ss:$16 sps:$4 sm:$0xff]   ;;  %v3117_v12 = vld [vmem:[#allocation5 + $0x1c8] ss:$16 sps:$4 sm:$0xff]  }
  0xab   : > { %1643 = vmatprep.subr.bf16.mxu0 %v3032_v9  ;;  %v3116_v9 = vld [vmem:[#allocation5 + $0x5c4] ss:$16 sps:$4 sm:$0xff]  }
  0xac   : > { %1590 = vmatmul.mubr.bf16.vlgmr.msra.gmra.mrb[0].mxu1 %v3687_v13 }
  0xad   : > { %1633 = vmatmul.mubr.bf16.vlgmr.msra.gmra.mrb[0].mxu0 %v3689_v16  ;;  %1730 = vmatpush1.bf16.msra.mxu1 %v3033_v15  ;;  %v3125_v15 = vld [vmem:[#allocation5 + $0x1ec] ss:$16 sps:$4 sm:$0xff]  }
  0xae   : > { %1644 = vmatpush1.bf16.msra.mxu0 %v3030_v14  ;;  %1731 = vmatprep.subr.bf16.mxu1 %v3041_v18  ;;  %v3122_v14 = vld [vmem:[#allocation5 + $0x5e4] ss:$16 sps:$4 sm:$0xff]   ;;  %v3123_v18 = vld [vmem:[#allocation5 + $0x1e8] ss:$16 sps:$4 sm:$0xff]  }
  0xaf   : > { %1645 = vmatprep.subr.bf16.mxu0 %v3038_v17  ;;  %1761 = vmatprep.mubr.bf16.mxu1 %v3675_v51  ;;  %v3081_v51 = vld [vmem:[#allocation5 + $0x108] ss:$16 sps:$4 sm:$0xff]   ;;  %v3120_v17 = vld [vmem:[#allocation5 + $0x5e0] ss:$16 sps:$4 sm:$0xff]  }
  0xb0   : > { %1675 = vmatprep.mubr.bf16.mxu0 %v3696_v45 }
  0xb1   : > { %1732 = vmatpush1.bf16.msra.mxu1 %v3039_v20  ;;  %v345_v20 = vld [vmem:[%s3663_s26 + $0x58] sm:$0xff] }
  0xb2   : > { %1646 = vmatpush1.bf16.msra.mxu0 %v3036_v19  ;;  %1733 = vmatprep.subr.bf16.mxu1 %v3047_v22  ;;  %v338_v19 = vld [vmem:[%s3663_s26 + $0x20] sm:$0xff] }
  0xb3   : > { %1647 = vmatprep.subr.bf16.mxu0 %v3044_v21  ;;  %v3128_v21 = vld [vmem:[#allocation5 + $0x20c] ss:$16 sps:$4 sm:$0xff]   ;;  %v3134_v22 = vld [vmem:[#allocation5 + $0x604] ss:$16 sps:$4 sm:$0xff]  }
  0xb5   : > { %1734 = vmatpush1.bf16.msra.mxu1 %v3045_v24  ;;  %v3126_v24 = vld [vmem:[#allocation5 + $0x208] ss:$16 sps:$4 sm:$0xff]  }
  0xb6   : > { %1648 = vmatpush1.bf16.msra.mxu0 %v3042_v23  ;;  %1735 = vmatprep.subr.bf16.mxu1 %v3053_v26  ;;  %v3701_v23 = vpack.c.bf16 %v345_v20, %v338_v19  ;;  %v3131_v26 = vld [vmem:[#allocation5 + $0x22c] ss:$16 sps:$4 sm:$0xff]   ;;  %v3177_v20 = vld [vmem:[#allocation5 + $0x408] ss:$16 sps:$4 sm:$0xff]  }
  0xb7   : > { %1649 = vmatprep.subr.bf16.mxu0 %v3050_v25  ;;  %v3132_v25 = vld [vmem:[#allocation5 + $0x600] ss:$16 sps:$4 sm:$0xff]   ;;  %v3260_v19 = vld [vmem:[#allocation7 + $0xa4] ss:$8 sps:$4 sm:$0xff]  }
  0xb9   : > { %1736 = vmatpush1.bf16.msra.mxu1 %v3051_v28  ;;  %v3137_v28 = vld [vmem:[#allocation5 + $0x24c] ss:$16 sps:$4 sm:$0xff]  }
  0xba   : > { %1650 = vmatpush1.bf16.msra.mxu0 %v3048_v27  ;;  %1737 = vmatprep.subr.bf16.mxu1 %v3059_v30  ;;  %v3129_v27 = vld [vmem:[#allocation5 + $0x228] ss:$16 sps:$4 sm:$0xff]  }
  0xbb   : > { %1651 = vmatprep.subr.bf16.mxu0 %v3056_v29  ;;  %v3467_v29 = vmov 0   ;;  %v3135_v30 = vld [vmem:[#allocation5 + $0x248] ss:$16 sps:$4 sm:$0xff]  }
  0xbd   : > { %1738 = vmatpush1.bf16.msra.mxu1 %v3057_v32  ;;  %v347_v32 = vld [vmem:[%s3663_s26 + $0x68] sm:$0xff] }
  0xbe   : > { %1652 = vmatpush1.bf16.msra.mxu0 %v3054_v31  ;;  %1739 = vmatprep.subr.bf16.mxu1 %v3065_v34  ;;  %v340_v31 = vld [vmem:[%s3663_s26 + $0x30] sm:$0xff]  ;;  %v3138_v34 = vld [vmem:[#allocation5 + $0x268] ss:$16 sps:$4 sm:$0xff]  }
  0xbf   : > { %1653 = vmatprep.subr.bf16.mxu0 %v3062_v33  ;;  %v3140_v33 = vld [vmem:[#allocation5 + $0x26c] ss:$16 sps:$4 sm:$0xff]  }
  0xc1   : > { %1740 = vmatpush1.bf16.msra.mxu1 %v3063_v36  ;;  %v3141_v36 = vld [vmem:[#allocation5 + $0x288] ss:$16 sps:$4 sm:$0xff]  }
  0xc2   : > { %1654 = vmatpush1.bf16.msra.mxu0 %v3060_v35  ;;  %1741 = vmatprep.subr.bf16.mxu1 %v3071_v38  ;;  %v3709_v35 = vpack.c.bf16 %v347_v32, %v340_v31  ;;  %v3144_v38 = vld [vmem:[#allocation5 + $0x2a8] ss:$16 sps:$4 sm:$0xff]   ;;  %v3188_v31 = vld [vmem:[#allocation5 + $0x46c] ss:$16 sps:$4 sm:$0xff]  }
  0xc3   : > { %1655 = vmatprep.subr.bf16.mxu0 %v3068_v37  ;;  %v3146_v37 = vld [vmem:[#allocation5 + $0x2ac] ss:$16 sps:$4 sm:$0xff]   ;;  %v3264_v32 = vld [vmem:[#allocation7 + $0xc0] ss:$8 sps:$4 sm:$0xff]  }
  0xc5   : > { %1742 = vmatpush1.bf16.msra.mxu1 %v3069_v40  ;;  %v3152_v40 = vld [vmem:[#allocation5 + $0x2ec] ss:$16 sps:$4 sm:$0xff]  }
  0xc6   : > { %1656 = vmatpush1.bf16.msra.mxu0 %v3066_v39  ;;  %1743 = vmatprep.subr.bf16.mxu1 %v3077_v44  ;;  %v3149_v39 = vld [vmem:[#allocation5 + $0x2cc] ss:$16 sps:$4 sm:$0xff]   ;;  %v3150_v44 = vld [vmem:[#allocation5 + $0x2e8] ss:$16 sps:$4 sm:$0xff]  }
  0xc7   : > { %1657 = vmatprep.subr.bf16.mxu0 %v3074_v41  ;;  %v3228_v41 = vld [vmem:[#allocation7] ss:$8 sps:$4 sm:$0xff]  }
  0xc9   : > { %1744 = vmatpush1.bf16.msra.mxu1 %v3075_v47  ;;  %v3231_v47 = vld [vmem:[#allocation7 + $0x10] ss:$8 sps:$4 sm:$0xff]  }
  0xca   : > { %1658 = vmatpush1.bf16.msra.mxu0 %v3072_v46  ;;  %1745 = vmatprep.subr.bf16.mxu1 %v3083_v49  ;;  %v3155_v46 = vld [vmem:[#allocation5 + $0x30c] ss:$16 sps:$4 sm:$0xff]   ;;  %v3153_v49 = vld [vmem:[#allocation5 + $0x308] ss:$16 sps:$4 sm:$0xff]  }
  0xcb   : > { %1659 = vmatprep.subr.bf16.mxu0 %v3080_v48  ;;  %v3236_v48 = vld [vmem:[#allocation7 + $0x24] ss:$8 sps:$4 sm:$0xff]  }
  0xcd   : > { %1746 = vmatpush1.bf16.msra.mxu1 %v3081_v51  ;;  %v3234_v51 = vld [vmem:[#allocation7 + $0x20] ss:$8 sps:$4 sm:$0xff]  }
  0xce   : > { %1660 = vmatpush1.bf16.msra.mxu0 %v3078_v50  ;;  %1747 = vmatprep.subr.bf16.mxu1 %v3089_v53  ;;  %v3158_v50 = vld [vmem:[#allocation5 + $0x32c] ss:$16 sps:$4 sm:$0xff]  }
  0xcf   : > { %1661 = vmatprep.subr.bf16.mxu0 %v3086_v52  ;;  %v3156_v52 = vld [vmem:[#allocation5 + $0x328] ss:$16 sps:$4 sm:$0xff]   ;;  %v3239_v53 = vld [vmem:[#allocation7 + $0x34] ss:$8 sps:$4 sm:$0xff]  }
  0xd1   : > { %1748 = vmatpush1.bf16.msra.mxu1 %v3087_v55  ;;  %v3237_v55 = vld [vmem:[#allocation7 + $0x30] ss:$8 sps:$4 sm:$0xff]  }
  0xd2   : > { %1662 = vmatpush1.bf16.msra.mxu0 %v3084_v54  ;;  %1749 = vmatprep.subr.bf16.mxu1 %v3095_v58  ;;  %v3161_v54 = vld [vmem:[#allocation5 + $0x34c] ss:$16 sps:$4 sm:$0xff]   ;;  %v3159_v58 = vld [vmem:[#allocation5 + $0x348] ss:$16 sps:$4 sm:$0xff]  }
  0xd3   : > { %1663 = vmatprep.subr.bf16.mxu0 %v3092_v57  ;;  %v3242_v57 = vld [vmem:[#allocation7 + $0x44] ss:$8 sps:$4 sm:$0xff]  }
  0xd5   : > { %1750 = vmatpush1.bf16.msra.mxu1 %v3093_v60  ;;  %v3240_v60 = vld [vmem:[#allocation7 + $0x40] ss:$8 sps:$4 sm:$0xff]  }
  0xd6   : > { %1664 = vmatpush1.bf16.msra.mxu0 %v3090_v59  ;;  %1751 = vmatprep.subr.bf16.mxu1 %v3101_v62  ;;  %v3164_v59 = vld [vmem:[#allocation5 + $0x36c] ss:$16 sps:$4 sm:$0xff]   ;;  %v3162_v62 = vld [vmem:[#allocation5 + $0x368] ss:$16 sps:$4 sm:$0xff]  }
  0xd7   : > { %1665 = vmatprep.subr.bf16.mxu0 %v3098_v61  ;;  %v3245_v61 = vld [vmem:[#allocation7 + $0x54] ss:$8 sps:$4 sm:$0xff]  }
  0xd9   : > { %1752 = vmatpush1.bf16.msra.mxu1 %v3099_v0  ;;  %v3243_v0 = vld [vmem:[#allocation7 + $0x50] ss:$8 sps:$4 sm:$0xff]  }
  0xda   : > { %1666 = vmatpush1.bf16.msra.mxu0 %v3096_v63  ;;  %1753 = vmatprep.subr.bf16.mxu1 %v3107_v2  ;;  %v3167_v63 = vld [vmem:[#allocation5 + $0x38c] ss:$16 sps:$4 sm:$0xff]   ;;  %v3165_v2 = vld [vmem:[#allocation5 + $0x388] ss:$16 sps:$4 sm:$0xff]  }
  0xdb   : > { %1667 = vmatprep.subr.bf16.mxu0 %v3104_v1  ;;  %v3248_v1 = vld [vmem:[#allocation7 + $0x64] ss:$8 sps:$4 sm:$0xff]  }
  0xdd   : > { %1754 = vmatpush1.bf16.msra.mxu1 %v3105_v4  ;;  %v3246_v4 = vld [vmem:[#allocation7 + $0x60] ss:$8 sps:$4 sm:$0xff]  }
  0xde   : > { %1668 = vmatpush1.bf16.msra.mxu0 %v3102_v3  ;;  %1755 = vmatprep.subr.bf16.mxu1 %v3113_v6  ;;  %v3170_v3 = vld [vmem:[#allocation5 + $0x3ac] ss:$16 sps:$4 sm:$0xff]   ;;  %v3168_v6 = vld [vmem:[#allocation5 + $0x3a8] ss:$16 sps:$4 sm:$0xff]  }
  0xdf   : > { %1669 = vmatprep.subr.bf16.mxu0 %v3110_v5  ;;  %v3251_v5 = vld [vmem:[#allocation7 + $0x74] ss:$8 sps:$4 sm:$0xff]  }
  0xe1   : > { %1756 = vmatpush1.bf16.msra.mxu1 %v3111_v8  ;;  %v3249_v8 = vld [vmem:[#allocation7 + $0x70] ss:$8 sps:$4 sm:$0xff]  }
  0xe2   : > { %1670 = vmatpush1.bf16.msra.mxu0 %v3108_v7  ;;  %1757 = vmatprep.subr.bf16.mxu1 %v3119_v10  ;;  %v3173_v7 = vld [vmem:[#allocation5 + $0x3cc] ss:$16 sps:$4 sm:$0xff]   ;;  %v3171_v10 = vld [vmem:[#allocation5 + $0x3c8] ss:$16 sps:$4 sm:$0xff]  }
  0xe3   : > { %1671 = vmatprep.subr.bf16.mxu0 %v3116_v9  ;;  %v3254_v9 = vld [vmem:[#allocation7 + $0x84] ss:$8 sps:$4 sm:$0xff]  }
  0xe5   : > { %1758 = vmatpush1.bf16.msra.mxu1 %v3117_v12  ;;  %v3252_v12 = vld [vmem:[#allocation7 + $0x80] ss:$8 sps:$4 sm:$0xff]  }
  0xe6   : > { %1672 = vmatpush1.bf16.msra.mxu0 %v3114_v11  ;;  %1759 = vmatprep.subr.bf16.mxu1 %v3125_v15  ;;  %v3176_v11 = vld [vmem:[#allocation5 + $0x3ec] ss:$16 sps:$4 sm:$0xff]   ;;  %v3174_v15 = vld [vmem:[#allocation5 + $0x3e8] ss:$16 sps:$4 sm:$0xff]  }
  0xe7   : > { %1673 = vmatprep.subr.bf16.mxu0 %v3122_v14  ;;  %v3257_v14 = vld [vmem:[#allocation7 + $0x94] ss:$8 sps:$4 sm:$0xff]  }
  0xe9   : > { %1760 = vmatpush1.bf16.msra.mxu1 %v3123_v18  ;;  %v3255_v18 = vld [vmem:[#allocation7 + $0x90] ss:$8 sps:$4 sm:$0xff]  }
  0xea   : > { %1674 = vmatpush1.bf16.msra.mxu0 %v3120_v17  ;;  %1772 = vmatprep.subr.bf16.mxu1 %v3128_v21  ;;  %v3179_v17 = vld [vmem:[#allocation5 + $0x40c] ss:$16 sps:$4 sm:$0xff]  }
  0xeb   : > { %1686 = vmatprep.subr.bf16.mxu0 %v3134_v22  ;;  %v3182_v21 = vld [vmem:[#allocation5 + $0x42c] ss:$16 sps:$4 sm:$0xff]   ;;  %v3258_v22 = vld [vmem:[#allocation7 + $0xa0] ss:$8 sps:$4 sm:$0xff]  }
  0xec   : > { %1762 = vmatmul.mubr.bf16.vlgmr.msra.gmra.mrb[4].mxu1 %v3687_v13  ;;  %v3143_v13 = vld [vmem:[#allocation5 + $0x28c] ss:$16 sps:$4 sm:$0xff]  }
  0xed   : > { %1676 = vmatmul.mubr.bf16.vlgmr.msra.gmra.mrb[0].mxu0 %v3701_v23  ;;  %1773 = vmatpush1.bf16.msra.mxu1 %v3126_v24  ;;  %v3263_v24 = vld [vmem:[#allocation7 + $0xb4] ss:$8 sps:$4 sm:$0xff]  }
  0xee   : > { %1687 = vmatpush1.bf16.msra.mxu0 %v3132_v25  ;;  %1774 = vmatprep.subr.bf16.mxu1 %v3131_v26  ;;  %v3180_v25 = vld [vmem:[#allocation5 + $0x428] ss:$16 sps:$4 sm:$0xff]   ;;  %v3185_v26 = vld [vmem:[#allocation5 + $0x44c] ss:$16 sps:$4 sm:$0xff]  }
  0xef   : > { %1718 = vmatprep.mubr.bf16.mxu0 %v3467_v29  ;;  %1804 = vmatprep.mubr.bf16.mxu1 %v3679_v56  ;;  %v3147_v56 = vld [vmem:[#allocation5 + $0x2c8] ss:$16 sps:$4 sm:$0xff]  }
  0xf0   : > { %2317 = vmatprep.subr.bf16.mxu0 %v3230_v42  ;;  %v3269_v42 = vld [vmem:[#allocation7 + $0xd4] ss:$8 sps:$4 sm:$0xff]  }
  0xf1   : > { %1775 = vmatpush1.bf16.msra.mxu1 %v3129_v27  ;;  %v3261_v27 = vld [vmem:[#allocation7 + $0xb0] ss:$8 sps:$4 sm:$0xff]  }
  0xf2   : > { %1776 = vmatprep.subr.bf16.mxu1 %v3137_v28  ;;  %v3266_v28 = vld [vmem:[#allocation7 + $0xc4] ss:$8 sps:$4 sm:$0xff]  }
  0xf5   : > { %1777 = vmatpush1.bf16.msra.mxu1 %v3135_v30  ;;  %v3183_v30 = vld [vmem:[#allocation5 + $0x448] ss:$16 sps:$4 sm:$0xff]  }
  0xf6   : > { %1778 = vmatprep.subr.bf16.mxu1 %v3140_v33  ;;  %v3186_v33 = vld [vmem:[#allocation5 + $0x468] ss:$16 sps:$4 sm:$0xff]  }
  0xf9   : > { %2753 = vmatmul.mubr.msk.bf16.vlgmr.msra.gmra.mrb[0].mxu0 %vm1553_vm0, %v3709_v35  ;;  %1779 = vmatpush1.bf16.msra.mxu1 %v3138_v34  ;;  %v3194_v34 = vld [vmem:[#allocation5 + $0x4ac] ss:$16 sps:$4 sm:$0xff]  }
  0xfa   : > { %1780 = vmatprep.subr.bf16.mxu1 %v3143_v13  ;;  %2318 = vmatpush1.bf16.msra.mxu0 %v3228_v41  ;;  %v3192_v13 = vld [vmem:[#allocation5 + $0x4a8] ss:$16 sps:$4 sm:$0xff]   ;;  %v3206_v41 = vld [vmem:[#allocation5 + $0x52c] ss:$16 sps:$4 sm:$0xff]  }
  0xfb   : > { %2319 = vmatprep.subr.bf16.mxu0 %v3233_v43  ;;  %v3267_v43 = vld [vmem:[#allocation7 + $0xd0] ss:$8 sps:$4 sm:$0xff]  }
  0xfd   : > { %1781 = vmatpush1.bf16.msra.mxu1 %v3141_v36  ;;  %v3197_v36 = vld [vmem:[#allocation5 + $0x4cc] ss:$16 sps:$4 sm:$0xff]  }
  0xfe   : > { %1782 = vmatprep.subr.bf16.mxu1 %v3146_v37  ;;  %2320 = vmatpush1.bf16.msra.mxu0 %v3231_v47  ;;  %v3195_v37 = vld [vmem:[#allocation5 + $0x4c8] ss:$16 sps:$4 sm:$0xff]   ;;  %v3272_v47 = vld [vmem:[#allocation7 + $0xe4] ss:$8 sps:$4 sm:$0xff]  }
  0xff   : > { %2321 = vmatprep.subr.bf16.mxu0 %v3236_v48  ;;  %v3270_v48 = vld [vmem:[#allocation7 + $0xe0] ss:$8 sps:$4 sm:$0xff]  }
 0x101   : > { %1783 = vmatpush1.bf16.msra.mxu1 %v3144_v38  ;;  %v3200_v38 = vld [vmem:[#allocation5 + $0x4ec] ss:$16 sps:$4 sm:$0xff]  }
 0x102   : > { %1784 = vmatprep.subr.bf16.mxu1 %v3149_v39  ;;  %2322 = vmatpush1.bf16.msra.mxu0 %v3234_v51  ;;  %v3198_v39 = vld [vmem:[#allocation5 + $0x4e8] ss:$16 sps:$4 sm:$0xff]   ;;  %v3275_v51 = vld [vmem:[#allocation7 + $0xf4] ss:$8 sps:$4 sm:$0xff]  }
 0x103   : > { %2323 = vmatprep.subr.bf16.mxu0 %v3239_v53  ;;  %v3210_v53 = vld [vmem:[#allocation5 + $0x568] ss:$16 sps:$4 sm:$0xff]  }
 0x105   : > { %1785 = vmatpush1.bf16.msra.mxu1 %v3147_v56  ;;  %v3203_v56 = vld [vmem:[#allocation5 + $0x50c] ss:$16 sps:$4 sm:$0xff]  }
 0x106   : > { %1786 = vmatprep.subr.bf16.mxu1 %v3152_v40  ;;  %2324 = vmatpush1.bf16.msra.mxu0 %v3237_v55  ;;  %v3201_v40 = vld [vmem:[#allocation5 + $0x508] ss:$16 sps:$4 sm:$0xff]   ;;  %v3278_v55 = vld [vmem:[#allocation7 + $0x104] ss:$8 sps:$4 sm:$0xff]  }
 0x107   : > { %2325 = vmatprep.subr.bf16.mxu0 %v3242_v57  ;;  %v3213_v57 = vld [vmem:[#allocation5 + $0x588] ss:$16 sps:$4 sm:$0xff]  }
 0x109   : > { %1787 = vmatpush1.bf16.msra.mxu1 %v3150_v44  ;;  %v3204_v44 = vld [vmem:[#allocation5 + $0x528] ss:$16 sps:$4 sm:$0xff]  }
 0x10a   : > { %1788 = vmatprep.subr.bf16.mxu1 %v3155_v46  ;;  %2326 = vmatpush1.bf16.msra.mxu0 %v3240_v60  ;;  %v3209_v46 = vld [vmem:[#allocation5 + $0x54c] ss:$16 sps:$4 sm:$0xff]  }
 0x10b   : > { %2327 = vmatprep.subr.bf16.mxu0 %v3245_v61  ;;  %v3221_v60 = vld [vmem:[#allocation5 + $0x5cc] ss:$16 sps:$4 sm:$0xff]   ;;  %v3219_v61 = vld [vmem:[#allocation5 + $0x5c8] ss:$16 sps:$4 sm:$0xff]  }
 0x10d   : > { %1789 = vmatpush1.bf16.msra.mxu1 %v3153_v49  ;;  %v3207_v49 = vld [vmem:[#allocation5 + $0x548] ss:$16 sps:$4 sm:$0xff]  }
 0x10e   : > { %1790 = vmatprep.subr.bf16.mxu1 %v3158_v50  ;;  %2328 = vmatpush1.bf16.msra.mxu0 %v3243_v0  ;;  %v3212_v50 = vld [vmem:[#allocation5 + $0x56c] ss:$16 sps:$4 sm:$0xff]  }
 0x10f   : > { %2329 = vmatprep.subr.bf16.mxu0 %v3248_v1  ;;  %v3227_v0 = vld [vmem:[#allocation5 + $0x60c] ss:$16 sps:$4 sm:$0xff]   ;;  %v3225_v1 = vld [vmem:[#allocation5 + $0x608] ss:$16 sps:$4 sm:$0xff]  }
 0x111   : > { %1791 = vmatpush1.bf16.msra.mxu1 %v3156_v52  ;;  %v3273_v52 = vld [vmem:[#allocation7 + $0xf0] ss:$8 sps:$4 sm:$0xff]  }
 0x112   : > { %1792 = vmatprep.subr.bf16.mxu1 %v3161_v54  ;;  %2330 = vmatpush1.bf16.msra.mxu0 %v3246_v4  ;;  %v3215_v54 = vld [vmem:[#allocation5 + $0x58c] ss:$16 sps:$4 sm:$0xff]  }
 0x113   : > { %2331 = vmatprep.subr.bf16.mxu0 %v3251_v5 }
 0x115   : > { %1793 = vmatpush1.bf16.msra.mxu1 %v3159_v58  ;;  %v3218_v58 = vld [vmem:[#allocation5 + $0x5ac] ss:$16 sps:$4 sm:$0xff]  }
 0x116   : > { %1794 = vmatprep.subr.bf16.mxu1 %v3164_v59  ;;  %2332 = vmatpush1.bf16.msra.mxu0 %v3249_v8  ;;  %v3216_v59 = vld [vmem:[#allocation5 + $0x5a8] ss:$16 sps:$4 sm:$0xff]  }
 0x117   : > { %2333 = vmatprep.subr.bf16.mxu0 %v3254_v9 }
 0x119   : > { %1795 = vmatpush1.bf16.msra.mxu1 %v3162_v62  ;;  %v3224_v62 = vld [vmem:[#allocation5 + $0x5ec] ss:$16 sps:$4 sm:$0xff]  }
 0x11a   : > { %1796 = vmatprep.subr.bf16.mxu1 %v3167_v63  ;;  %2334 = vmatpush1.bf16.msra.mxu0 %v3252_v12  ;;  %v3222_v63 = vld [vmem:[#allocation5 + $0x5e8] ss:$16 sps:$4 sm:$0xff]  }
 0x11b   : > { %2335 = vmatprep.subr.bf16.mxu0 %v3257_v14 }
 0x11d   : > { %1797 = vmatpush1.bf16.msra.mxu1 %v3165_v2 }
 0x11e   : > { %1798 = vmatprep.subr.bf16.mxu1 %v3170_v3  ;;  %2336 = vmatpush1.bf16.msra.mxu0 %v3255_v18 }
 0x11f   : > { %2337 = vmatprep.subr.bf16.mxu0 %v3260_v19 }
 0x121   : > { %1799 = vmatpush1.bf16.msra.mxu1 %v3168_v6  ;;  %v553_v6 = vlaneseq }
 0x122   : > { %1800 = vmatprep.subr.bf16.mxu1 %v3173_v7  ;;  %2338 = vmatpush1.bf16.msra.mxu0 %v3258_v22 }
 0x123   : > { %2339 = vmatprep.subr.bf16.mxu0 %v3263_v24  ;;  %v3719_v7 = vshrl.u32 %v553_v6, 7 }
 0x125   : > { %1801 = vmatpush1.bf16.msra.mxu1 %v3171_v10  ;;  %v3722_v8 = vsub.s32 0, %v3719_v7 }
 0x126   : > { %1802 = vmatprep.subr.bf16.mxu1 %v3176_v11  ;;  %2340 = vmatpush1.bf16.msra.mxu0 %v3261_v27 }
 0x127   : > { %2341 = vmatprep.subr.bf16.mxu0 %v3266_v28 }
 0x129   : > { %1803 = vmatpush1.bf16.msra.mxu1 %v3174_v15 }
 0x12a   : > { %1815 = vmatprep.subr.bf16.mxu1 %v3179_v17  ;;  %2342 = vmatpush1.bf16.msra.mxu0 %v3264_v32 }
 0x12b   : > { %2343 = vmatprep.subr.bf16.mxu0 %v3269_v42  ;;  %v3293_v42 = vld [vmem:[#allocation7 + $0x154] ss:$8 sps:$4 sm:$0xff]  }
 0x12c   : > { %1805 = vmatmul.mubr.bf16.vlgmr.msra.gmra.mrb[4].mxu1 %v3689_v16  ;;  %v3191_v16 = vld [vmem:[#allocation5 + $0x48c] ss:$16 sps:$4 sm:$0xff]  }
 0x12d   : > { %1816 = vmatpush1.bf16.msra.mxu1 %v3177_v20  ;;  %1847 = vmatprep.mubr.bf16.mxu1 %v3696_v45  ;;  %v3189_v45 = vld [vmem:[#allocation5 + $0x488] ss:$16 sps:$4 sm:$0xff]  }
 0x12e   : > { %1817 = vmatprep.subr.bf16.mxu1 %v3182_v21  ;;  %2344 = vmatpush1.bf16.msra.mxu0 %v3267_v43  ;;  %v3291_v43 = vld [vmem:[#allocation7 + $0x150] ss:$8 sps:$4 sm:$0xff]  }
 0x12f   : > { %2345 = vmatprep.subr.bf16.mxu0 %v3272_v47  ;;  %v3299_v47 = vld [vmem:[#allocation7 + $0x174] ss:$8 sps:$4 sm:$0xff]  }
 0x131   : > { %1818 = vmatpush1.bf16.msra.mxu1 %v3180_v25 }
 0x132   : > { %1819 = vmatprep.subr.bf16.mxu1 %v3185_v26  ;;  %2346 = vmatpush1.bf16.msra.mxu0 %v3270_v48  ;;  %v3297_v48 = vld [vmem:[#allocation7 + $0x170] ss:$8 sps:$4 sm:$0xff]  }
 0x133   : > { %2347 = vmatprep.subr.bf16.mxu0 %v3275_v51  ;;  %v3305_v51 = vld [vmem:[#allocation7 + $0x194] ss:$8 sps:$4 sm:$0xff]  }
 0x135   : > { %1820 = vmatpush1.bf16.msra.mxu1 %v3183_v30 }
 0x136   : > { %1821 = vmatprep.subr.bf16.mxu1 %v3188_v31  ;;  %2348 = vmatpush1.bf16.msra.mxu0 %v3273_v52  ;;  %v3303_v52 = vld [vmem:[#allocation7 + $0x190] ss:$8 sps:$4 sm:$0xff]  }
 0x137   : > { %2360 = vmatprep.subr.bf16.mxu0 %v3278_v55  ;;  %v3311_v55 = vld [vmem:[#allocation7 + $0x1b4] ss:$8 sps:$4 sm:$0xff]  }
 0x139   : > { %1822 = vmatpush1.bf16.msra.mxu1 %v3186_v33 }
 0x13a   : > { %1823 = vmatprep.subr.bf16.mxu1 %v3191_v16 }
 0x13d   : > { %1824 = vmatpush1.bf16.msra.mxu1 %v3189_v45 }
 0x13e   : > { %1825 = vmatprep.subr.bf16.mxu1 %v3194_v34  ;;  %v3276_v34 = vld [vmem:[#allocation7 + $0x100] ss:$8 sps:$4 sm:$0xff]  }
 0x141   : > { %1826 = vmatpush1.bf16.msra.mxu1 %v3192_v13  ;;  %v3281_v13 = vld [vmem:[#allocation7 + $0x114] ss:$8 sps:$4 sm:$0xff]  }
 0x142   : > { %1827 = vmatprep.subr.bf16.mxu1 %v3197_v36  ;;  %v3279_v36 = vld [vmem:[#allocation7 + $0x110] ss:$8 sps:$4 sm:$0xff]  }
 0x145   : > { %1828 = vmatpush1.bf16.msra.mxu1 %v3195_v37  ;;  %v3284_v37 = vld [vmem:[#allocation7 + $0x124] ss:$8 sps:$4 sm:$0xff]  }
 0x146   : > { %1829 = vmatprep.subr.bf16.mxu1 %v3200_v38  ;;  %v3282_v38 = vld [vmem:[#allocation7 + $0x120] ss:$8 sps:$4 sm:$0xff]  }
 0x149   : > { %1830 = vmatpush1.bf16.msra.mxu1 %v3198_v39  ;;  %v3287_v39 = vld [vmem:[#allocation7 + $0x134] ss:$8 sps:$4 sm:$0xff]  }
 0x14a   : > { %1831 = vmatprep.subr.bf16.mxu1 %v3203_v56  ;;  %v3285_v56 = vld [vmem:[#allocation7 + $0x130] ss:$8 sps:$4 sm:$0xff]  }
 0x14d   : > { %1832 = vmatpush1.bf16.msra.mxu1 %v3201_v40  ;;  %v3290_v40 = vld [vmem:[#allocation7 + $0x144] ss:$8 sps:$4 sm:$0xff]  }
 0x14e   : > { %1833 = vmatprep.subr.bf16.mxu1 %v3206_v41  ;;  %v3288_v41 = vld [vmem:[#allocation7 + $0x140] ss:$8 sps:$4 sm:$0xff]  }
 0x151   : > { %1834 = vmatpush1.bf16.msra.mxu1 %v3204_v44  ;;  %v3296_v44 = vld [vmem:[#allocation7 + $0x164] ss:$8 sps:$4 sm:$0xff]  }
 0x152   : > { %1835 = vmatprep.subr.bf16.mxu1 %v3209_v46  ;;  %v3294_v46 = vld [vmem:[#allocation7 + $0x160] ss:$8 sps:$4 sm:$0xff]  }
 0x155   : > { %1836 = vmatpush1.bf16.msra.mxu1 %v3207_v49  ;;  %v3302_v49 = vld [vmem:[#allocation7 + $0x184] ss:$8 sps:$4 sm:$0xff]  }
 0x156   : > { %1837 = vmatprep.subr.bf16.mxu1 %v3212_v50  ;;  %v3300_v50 = vld [vmem:[#allocation7 + $0x180] ss:$8 sps:$4 sm:$0xff]  }
 0x159   : > { %1838 = vmatpush1.bf16.msra.mxu1 %v3210_v53  ;;  %v3308_v53 = vld [vmem:[#allocation7 + $0x1a4] ss:$8 sps:$4 sm:$0xff]  }
 0x15a   : > { %1839 = vmatprep.subr.bf16.mxu1 %v3215_v54  ;;  %v3306_v54 = vld [vmem:[#allocation7 + $0x1a0] ss:$8 sps:$4 sm:$0xff]  }
 0x15d   : > { %1840 = vmatpush1.bf16.msra.mxu1 %v3213_v57  ;;  %v3309_v57 = vld [vmem:[#allocation7 + $0x1b0] ss:$8 sps:$4 sm:$0xff]  }
 0x15e   : > { %1841 = vmatprep.subr.bf16.mxu1 %v3218_v58  ;;  %v3314_v58 = vld [vmem:[#allocation7 + $0x1c4] ss:$8 sps:$4 sm:$0xff]  }
 0x161   : > { %1842 = vmatpush1.bf16.msra.mxu1 %v3216_v59  ;;  %v3312_v59 = vld [vmem:[#allocation7 + $0x1c0] ss:$8 sps:$4 sm:$0xff]  }
 0x162   : > { %1843 = vmatprep.subr.bf16.mxu1 %v3221_v60  ;;  %v3317_v60 = vld [vmem:[#allocation7 + $0x1d4] ss:$8 sps:$4 sm:$0xff]  }
 0x165   : > { %1844 = vmatpush1.bf16.msra.mxu1 %v3219_v61  ;;  %v3315_v61 = vld [vmem:[#allocation7 + $0x1d0] ss:$8 sps:$4 sm:$0xff]  }
 0x166   : > { %1845 = vmatprep.subr.bf16.mxu1 %v3224_v62  ;;  %v3320_v62 = vld [vmem:[#allocation7 + $0x1e4] ss:$8 sps:$4 sm:$0xff]  }
 0x169   : > { %1846 = vmatpush1.bf16.msra.mxu1 %v3222_v63  ;;  %v3318_v63 = vld [vmem:[#allocation7 + $0x1e0] ss:$8 sps:$4 sm:$0xff]  }
 0x16a   : > { %1858 = vmatprep.subr.bf16.mxu1 %v3227_v0  ;;  %v3323_v0 = vld [vmem:[#allocation7 + $0x1f4] ss:$8 sps:$4 sm:$0xff]  }
 0x16c   : > { %1848 = vmatmul.mubr.bf16.vlgmr.msra.gmra.mrb[4].mxu1 %v3701_v23  ;;  %v3727_v23 = vld [vmem:[%s3770_s2] sm:$0xf] }
 0x16d   : > { %1859 = vmatpush1.bf16.msra.mxu1 %v3225_v1  ;;  %1890 = vmatprep.mubr.bf16.mxu1 %v3467_v29  ;;  %v3730_v29 = vsub.s32 1, %v3719_v7  ;;  %v3321_v1 = vld [vmem:[#allocation7 + $0x1f0] ss:$8 sps:$4 sm:$0xff]  }
 0x16f   : > { %v560_v9 = vrot.slane %v3727_v23, %v3730_v29 }
 0x178   : > { %2754 = vmatmul.mubr.msk.bf16.vlgmr.msra.gmra.mrb[4].mxu1 %vm1553_vm0, %v3709_v35  ;;  %v556_v35 = vrot.slane %v3727_v23, %v3722_v8 }
 0x17f   : > { %v1591_v2 = vpop.f32.mrb[0].mxu1 }
 0x180   : > { %v1593_v3 = vpop.f32.mrb[1].mxu1  ;;  %v1592_v10 = vadd.f32 %v1591_v2, %v556_v35  ;;  %v563_v2 = vsub.s32 2, %v3719_v7 }
 0x181   : > { %v1595_v4 = vpop.f32.mrb[2].mxu1  ;;  %v1594_v11 = vadd.f32 %v1593_v3, %v560_v9  ;;  %v567_v3 = vsub.s32 3, %v3719_v7 }
 0x182   : > { %v1597_v5 = vpop.f32.mrb[3].mxu1  ;;  %v1596_v14 = vadd.f32 %v1595_v4, %v556_v35  ;;  %v564_v4 = vrot.slane %v3727_v23, %v563_v2 }
 0x183   : > { %v1598_v18 = vadd.f32 %v1597_v5, %v560_v9  ;;  %v568_v5 = vrot.slane %v3727_v23, %v567_v3  ;;  %v1985_v23 = vld [vmem:[%s3772_s4] sm:$0x3] }
 0x1cc   : > { %v1720_v12 = vpop.f32.mrb[0].mxu0 }
 0x1cd   : > { %v2825_v15 = vadd.f32 %v1720_v12, %v1592_v10  ;;  %v1722_v17 = vpop.f32.mrb[1].mxu0 }
 0x1ce   : > { %v2827_v19 = vadd.f32 %v1722_v17, %v1594_v11  ;;  %v1724_v20 = vpop.f32.mrb[2].mxu0 }
 0x1cf   : > { %v1901_v21 = vmul.f32 0.2, %v2825_v15  ;;  %v2829_v22 = vadd.f32 %v1724_v20, %v1596_v14  ;;  %v1726_v24 = vpop.f32.mrb[3].mxu0 }
 0x1d0   : > { %v1902_v25 = vmul.f32 0.2, %v2827_v19  ;;  %v2831_v26 = vadd.f32 %v1726_v24, %v1598_v18 }
 0x1d1   : > { %v1905_v27 = vmul.f32 0.2, %v2829_v22  ;;  %v1909_v30 = vmax.f32 %v2825_v15, %v1901_v21 }
 0x1d2   : > { %v1906_v28 = vmul.f32 0.2, %v2831_v26  ;;  %v1910_v32 = vmax.f32 %v2827_v19, %v1902_v25 }
 0x1d3   : > { %v1913_v31 = vmax.f32 %v2829_v22, %v1905_v27  ;;  %v1990_v27 = vrot.slane %v1985_v23, %v3722_v8 }
 0x1d4   : > { %v1914_v33 = vmax.f32 %v2831_v26, %v1906_v28  ;;  %v1994_v28 = vrot.slane %v1985_v23, %v3730_v29 }
 0x1d5   : > { %v1917_v16 = vpack.c.bf16 %v1913_v31, %v1909_v30  ;;  %v2411_v31 = vld [vmem:[%s3773_s5] sm:$0x3] }
 0x1d6   : > { %v1918_v45 = vpack.c.bf16 %v1914_v33, %v1910_v32 }
 0x1d8   : > { %2349 = vmatprep.mubr.bf16.mxu0 %v1918_v45 }
 0x1d9   : > { %2350 = vmatmul.mubr.bf16.vlgmr.msra.gmra.mrb[4].mxu0 %v1917_v16 }
 0x1da   : > { %2361 = vmatpush1.bf16.msra.mxu0 %v3276_v34 }
 0x1db   : > { %2362 = vmatprep.subr.bf16.mxu0 %v3281_v13 }
 0x1de   : > { %2363 = vmatpush1.bf16.msra.mxu0 %v3279_v36 }
 0x1df   : > { %2364 = vmatprep.subr.bf16.mxu0 %v3284_v37  ;;  %v2416_v37 = vrot.slane %v2411_v31, %v3722_v8  ;;  %v2819_v8 = vld [vmem:[#allocation2] ss:$0 sm:$0xff] }
 0x1e2   : > { %2365 = vmatpush1.bf16.msra.mxu0 %v3282_v38 }
 0x1e3   : > { %2366 = vmatprep.subr.bf16.mxu0 %v3287_v39 }
 0x1e6   : > { %2367 = vmatpush1.bf16.msra.mxu0 %v3285_v56  ;;  %v2420_v56 = vrot.slane %v2411_v31, %v3730_v29 }
 0x1e7   : > { %2368 = vmatprep.subr.bf16.mxu0 %v3290_v40 }
 0x1ea   : > { %2369 = vmatpush1.bf16.msra.mxu0 %v3288_v41 }
 0x1eb   : > { %2370 = vmatprep.subr.bf16.mxu0 %v3293_v42 }
 0x1ee   : > { %2371 = vmatpush1.bf16.msra.mxu0 %v3291_v43 }
 0x1ef   : > { %2372 = vmatprep.subr.bf16.mxu0 %v3296_v44 }
 0x1f2   : > { %2373 = vmatpush1.bf16.msra.mxu0 %v3294_v46 }
 0x1f3   : > { %2374 = vmatprep.subr.bf16.mxu0 %v3299_v47 }
 0x1f6   : > { %2375 = vmatpush1.bf16.msra.mxu0 %v3297_v48 }
 0x1f7   : > { %2376 = vmatprep.subr.bf16.mxu0 %v3302_v49 }
 0x1fa   : > { %2377 = vmatpush1.bf16.msra.mxu0 %v3300_v50 }
 0x1fb   : > { %2378 = vmatprep.subr.bf16.mxu0 %v3305_v51 }
 0x1fe   : > { %2379 = vmatpush1.bf16.msra.mxu0 %v3303_v52 }
 0x1ff   : > { %2380 = vmatprep.subr.bf16.mxu0 %v3308_v53 }
 0x202   : > { %2381 = vmatpush1.bf16.msra.mxu0 %v3306_v54 }
 0x203   : > { %2382 = vmatprep.subr.bf16.mxu0 %v3311_v55 }
 0x206   : > { %2383 = vmatpush1.bf16.msra.mxu0 %v3309_v57 }
 0x207   : > { %2384 = vmatprep.subr.bf16.mxu0 %v3314_v58 }
 0x20a   : > { %2385 = vmatpush1.bf16.msra.mxu0 %v3312_v59 }
 0x20b   : > { %2386 = vmatprep.subr.bf16.mxu0 %v3317_v60 }
 0x20e   : > { %2387 = vmatpush1.bf16.msra.mxu0 %v3315_v61 }
 0x20f   : > { %2388 = vmatprep.subr.bf16.mxu0 %v3320_v62 }
 0x212   : > { %2389 = vmatpush1.bf16.msra.mxu0 %v3318_v63 }
 0x213   : > { %2390 = vmatprep.subr.bf16.mxu0 %v3323_v0 }
 0x216   : > { %2391 = vmatpush1.bf16.msra.mxu0 %v3321_v1 }
 0x24b   : > { %v1892_v6 = vpop.f32.mrb[4].mxu1 }
 0x24c   : > { %v2832_v35 = vadd.f32 %v1892_v6, %v564_v4  ;;  %v1894_v9 = vpop.f32.mrb[5].mxu1 }
 0x24d   : > { %v2833_v10 = vadd.f32 %v1894_v9, %v568_v5  ;;  %v1896_v11 = vpop.f32.mrb[6].mxu1 }
 0x24e   : > { %v1903_v12 = vmul.f32 0.2, %v2832_v35  ;;  %v2834_v14 = vadd.f32 %v1896_v11, %v564_v4  ;;  %v1898_v15 = vpop.f32.mrb[7].mxu1 }
 0x24f   : > { %v1904_v17 = vmul.f32 0.2, %v2833_v10  ;;  %v2835_v18 = vadd.f32 %v1898_v15, %v568_v5 }
 0x250   : > { %v1907_v19 = vmul.f32 0.2, %v2834_v14  ;;  %v1911_v21 = vmax.f32 %v2832_v35, %v1903_v12 }
 0x251   : > { %v1908_v20 = vmul.f32 0.2, %v2835_v18  ;;  %v1912_v24 = vmax.f32 %v2833_v10, %v1904_v17 }
 0x252   : > { %v1915_v22 = vmax.f32 %v2834_v14, %v1907_v19 }
 0x253   : > { %v1916_v7 = vmax.f32 %v2835_v18, %v1908_v20 }
 0x254   : > { %v1919_v25 = vpack.c.bf16 %v1915_v22, %v1911_v21 }
 0x255   : > { %v1920_v26 = vpack.c.bf16 %v1916_v7, %v1912_v24 }
 0x257   : > { %2392 = vmatprep.mubr.bf16.mxu0 %v1920_v26 }
 0x258   : > { %2393 = vmatmul.mubr.bf16.vlgmr.msra.gmra.mrb[4].mxu0 %v1919_v25 }
 0x32b   : > { %v2394_v30 = vpop.f32.mrb[4].mxu0 }
 0x32c   : > { %v2836_v32 = vadd.f32 %v2394_v30, %v1990_v27  ;;  %v2396_v33 = vpop.f32.mrb[5].mxu0 }
 0x32d   : > { %v2837_v16 = vadd.f32 %v2396_v33, %v1994_v28  ;;  %v2398_v45 = vpop.f32.mrb[6].mxu0 }
 0x32e   : > { %v2403_v34 = vmul.f32 0.2, %v2836_v32  ;;  %v2838_v13 = vadd.f32 %v2398_v45, %v1990_v27  ;;  %v2400_v36 = vpop.f32.mrb[7].mxu0 }
 0x32f   : > { %v2404_v38 = vmul.f32 0.2, %v2837_v16  ;;  %v2839_v39 = vadd.f32 %v2400_v36, %v1994_v28 }
 0x330   : > { %v2407_v40 = vmax.f32 %v2836_v32, %v2403_v34  ;;  %v2405_v41 = vmul.f32 0.2, %v2838_v13 }
 0x331   : > { %v2408_v42 = vmax.f32 %v2837_v16, %v2404_v38  ;;  %v2406_v43 = vmul.f32 0.2, %v2839_v39 }
 0x332   : > { %v2409_v44 = vmax.f32 %v2838_v13, %v2405_v41  ;;  %v2423_v46 = vmul.f32 %v2416_v37, %v2407_v40 }
 0x333   : > { %v2410_v47 = vmax.f32 %v2839_v39, %v2406_v43  ;;  %v2424_v48 = vmul.f32 %v2420_v56, %v2408_v42 }
 0x334   : > { %v2425_v49 = vmul.f32 %v2416_v37, %v2409_v44 }
 0x335   : > { %v2427_v50 = vadd.f32 %v2424_v48, %v2423_v46  ;;  %v2426_v51 = vmul.f32 %v2420_v56, %v2410_v47 }
 0x337   : > { %2428 = vadd.xlane.f32.xlu0 %v2427_v50  ;;  %v2430_v52 = vadd.f32 %v2426_v51, %v2425_v49 }
 0x33b   : > { %2431 = vadd.xlane.f32.xlu0 %v2430_v52 }
 0x3c4   : > { %v2429_v53 = vpop.xlane.xlu0 %2428 }
 0x3c5   : > { %v2440_v54 = vadd.f32 %v2819_v8, %v2429_v53 }
 0x3c7   : > { %v2820_v55 = vmul.f32 -1.442695, %v2440_v54 }
 0x3c8   : > { %v2432_v29 = vpop.xlane.xlu0 %2431 }
 0x3c9   : > { %3324 = vpow2.f32 %v2820_v55  ;;  %v2441_v57 = vadd.f32 %v2819_v8, %v2432_v29 }
 0x3cb   : > { %v2821_v58 = vmul.f32 -1.442695, %v2441_v57 }
 0x3cd   : > { %3326 = vpow2.f32 %v2821_v58 }
 0x3d3   : > { %v3325_v59 = vpop.eup %3324 }
 0x3d4   : > { %v2448_v60 = vadd.f32 1.0, %v3325_v59 }
 0x3d6   : > { %3328 = vrcp.f32 %v2448_v60 }
 0x3d7   : > { %v3327_v61 = vpop.eup %3326 }
 0x3d8   : > { %v2449_v62 = vadd.f32 1.0, %v3327_v61 }
 0x3da   : > { %3330 = vrcp.f32 %v2449_v62 }
 0x3e0   : > { %v3329_v63 = vpop.eup %3328 }
 0x3e1   : > { %2455 = vst.msk [vmem:[%s331_s12] sm:$0xff] %vm2454_vm1, %v3329_v63 }
 0x3e4   : > { %v3331_v0 = vpop.eup %3330 }
 0x3e5   : > { %2456 = vst.msk [vmem:[%s331_s12 + $0x8] sm:$0xff] %vm2454_vm1, %v3331_v0 }
 0x3e6 PF: > { %p20_p6 = scmp.ge.s32.totalorder %s3607_s24, 4   ;;  %s3788_s26 = smov %s3448_s27 }
 0x3e7   : > { %s3789_s27 = smov %s3452_s28  ;;  %s3790_s28 = smov %s3616_s10 }
 0x3e8   : > { %s3791_s29 = smov %s3607_s24  ;;  %22 = sbr.rel (!%p20_p6) target bundleno = 7 (0x7), region = 96 }
 0x3ef   :  { %2479 = vsyncpa [#allocation4], 1 }
 0x3f0   :  { %2481 = vsyncpa [#allocation4 + $0x1], 1 }
 0x3f1   :  { %2482 = vsyncpa [#allocation6], 1 }

// kernel: tpu_custom_call.1
= control target key start
LH: loop header
LB: loop body
LE: loop exit
PB: predicated region body
PF: predicated region fallthrough
CT: control target
= control target key end

     0   :  { %s3768_s0 = inlined_call_operand.hbm [shape: f32[32,784], index: 0, kind: input, shape index: {}]   ;;  %s3769_s1 = inlined_call_operand.hbm [shape: bf16[784,512], index: 1, kind: input, shape index: {}]   ;;  %s3770_s2 = inlined_call_operand.vmem [shape: f32[1,512], index: 2, kind: input, shape index: {}]   ;;  %s3771_s3 = inlined_call_operand.hbm [shape: bf16[512,256], index: 3, kind: input, shape index: {}]   ;;  %s3772_s4 = inlined_call_operand.vmem [shape: f32[1,256], index: 4, kind: input, shape index: {}]   ;;  %s3773_s5 = inlined_call_operand.vmem [shape: f32[1,256], index: 5, kind: input, shape index: {}]   ;;  %s3774_s6 = inlined_call_operand.<no memory space> [shape: f32[1,1], index: 6, kind: input, shape index: {}]   ;;  %s3775_s7 = inlined_call_operand.vmem [shape: f32[32,1], index: 7, kind: output, shape index: {}]  }
   0x1   :  { %v12_v0 = vstv %s3774_s6 }
   0x2   :  { %13 = vst [vmem:[#allocation2] sm:$0x1] %v12_v0 }
   0x3   :  { %14 = vsyncpa [#allocation4], 0 }
   0x4   :  { %16 = vsyncpa [#allocation4 + $0x1], 0 }
   0x5   :  { %17 = vsyncpa [#allocation6], 0  ;;  %s3511_s26 = smov 0   ;;  %s3513_s27 = smov 0  }
   0x6   :  { %s3515_s28 = smov 0   ;;  %s3517_s29 = smov 0  }
   0x7 LB: > { %s2543_s6 = sadd.s32 4294967295, %s3456_s29   ;;  %p43_p0 = scmp.ne.s32.totalorder %s3448_s27, %s3444_s26  ;;  %s3456_s29 = sphi %s3517_s29, %s3791_s29   ;;  %s3452_s28 = sphi %s3515_s28, %s3790_s28   ;;  %s3448_s27 = sphi %s3513_s27, %s3789_s27   ;;  %s3444_s26 = sphi %s3511_s26, %s3788_s26  }
   0x8   : > { %p3533_p1 = scmp.eq.s32.totalorder %s2543_s6, 0  ;;  %p2545_p2 = scmp.ge.s32.totalorder %s3456_s29, 1 }
   0x9   : > { %p206_p3 = scmp.lt.s32.totalorder %s3456_s29, 3  ;;  %s3458_s10 = smov [#allocation5]  }
   0xa   : > { %s3780_s30 = scalar_select %p3533_p1, 1, 0 }
   0xb   : > { %p3541_p4 = por %p3533_p1, %p43_p0  ;;  %p3545_p5 = pnand %p2545_p2, %p206_p3 }
   0xc   : > { %s218_s11 = sshll.u32 %s3458_s10, 4  ;;  %s3459_s13 = smov [#allocation7]   ;;  %s219_s11 = int_to_ptr.vmem [resolvable:$true] %s218_s11 }
   0xd   : > { %s3781_s8 = scalar_select %p3541_p4, 1, 0 }
   0xe   : > { %s3782_s9 = scalar_select %p3545_p5, 1, 0 }
   0xf   : > { %p2877_p6 = pneg %p3545_p5  ;;  %s234_s14 = sshll.u32 %s3459_s13, 4  ;;  %s3557_s14 = int_to_ptr.vmem [resolvable:$true] %s234_s14 }
  0x10   : > { %s3332_s17 = scalar_lea.hbm %s3769_s1, 25088 }
  0x11   : > { %p3553_p7 = pnand %p2877_p6, %p3533_p1  ;;  %p3333_p8 = scmp.ne.s32.totalorder %s3769_s1, %s3332_s17 }
  0x12   : > { %p3339_p12 = scmp.lt.u32.totalorder %s3332_s17, %s3769_s1 }
  0x13   : > { %p3334_p9 = pneg %p3553_p7 }
  0x15   : > { %p3335_p10 = pnand %p3334_p9, %p3333_p8 }
  0x17   : > { %p3336_p11 = pneg %p3335_p10 }
  0x19   : > { %p3341_p13 = pnand %p3339_p12, %p3336_p11 }
  0x1b   : > { %3344 = shalt.err (!%p3341_p13)
}
  0x1c   : > { %s3345_s22 = scalar_lea.vmem %s219_s11, 25088  ;;  %p3353_p6 = scmp.lt.s32.totalorder %s219_s11, %s219_s11 }
  0x1d   : > { %p3346_p0 = scmp.ne.s32.totalorder %s219_s11, %s3345_s22  ;;  %p3354_p1 = scmp.lt.s32.totalorder %s3345_s22, %s3345_s22 }
  0x1f   : > { %p3348_p2 = pnand %p3346_p0, %p3334_p9  ;;  %p3355_p4 = por %p3354_p1, %p3353_p6 }
  0x21   : > { %p3349_p3 = pneg %p3348_p2 }
  0x23   : > { %p3356_p5 = pnand %p3355_p4, %p3349_p3 }
  0x25   : > { %3359 = shalt.err (!%p3356_p5)
}
  0x26   : > { %s3460_s23 = smov 256   ;;  %s3461_s24 = smov 16  }
  0x27   : > { %2880 = dma.hbm_to_vmem [thread:$0]  (!%p3553_p7), %s3769_s1, 25088, %s219_s11, [#allocation6], %s3460_s23, %s3460_s23, %s3461_s24  }
  0x28   : > { %s3360_s15 = scalar_lea.hbm %s3771_s3, 8192 }
  0x29   : > { %p3361_p8 = scmp.ne.s32.totalorder %s3771_s3, %s3360_s15  ;;  %p3367_p5 = scmp.lt.u32.totalorder %s3360_s15, %s3771_s3 }
  0x2b   : > { %p3363_p1 = pnand %p3361_p8, %p3334_p9 }
  0x2d   : > { %p3364_p4 = pneg %p3363_p1 }
  0x2f   : > { %p3369_p10 = pnand %p3367_p5, %p3364_p4 }
  0x31   : > { %3372 = shalt.err (!%p3369_p10)
}
  0x32   : > { %s3373_s11 = scalar_lea.vmem %s3557_s14, 8192  ;;  %p3381_p0 = scmp.lt.s32.totalorder %s3557_s14, %s3557_s14 }
  0x33   : > { %p3374_p11 = scmp.ne.s32.totalorder %s3557_s14, %s3373_s11  ;;  %p3382_p2 = scmp.lt.s32.totalorder %s3373_s11, %s3373_s11 }
  0x35   : > { %p3376_p12 = pnand %p3374_p11, %p3334_p9  ;;  %p3383_p3 = por %p3382_p2, %p3381_p0 }
  0x37   : > { %p3377_p13 = pneg %p3376_p12 }
  0x39   : > { %p3384_p6 = pnand %p3383_p3, %p3377_p13 }
  0x3b   : > { %3387 = shalt.err (!%p3384_p6)
}
  0x3c   : > { %s3462_s20 = smov 128   ;;  %s3463_s21 = smov 8  }
  0x3d   : > { %2883 = dma.hbm_to_vmem [thread:$0]  (!%p3553_p7), %s3771_s3, 8192, %s3557_s14, [#allocation6], %s3462_s20, %s3462_s20, %s3463_s21  }
  0x3e   : > { %s3607_s24 = sadd.s32 1, %s3456_s29   ;;  %s30_s26 = sadd.s32 1, %s3452_s28 }
  0x3f   : > { %s27_s25 = ssub.s32 %s3456_s29, %s3607_s24  ;;  %p37_p8 = scmp.ne.s32.totalorder %s3452_s28, %s3448_s27 }
  0x40   : > { %p28_p9 = scmp.eq.s32.totalorder %s27_s25, 0  ;;  %p38_p1 = scmp.eq.s32.totalorder %s3456_s29, 0 }
  0x41   : > { %p2890_p5 = scmp.lt.s32.totalorder %s3456_s29, 2  ;;  %s257_s13 = sand.u32 1, %s3452_s28  }
  0x42   : > { %s3616_s10 = scalar_select %p28_p9, %s3452_s28, %s30_s26  }
  0x43   : > { %p39_p4 = por %p38_p1, %p37_p8  ;;  %s2865_s15 = smul.u32 1792, %s3456_s29 }
  0x44   : > { %s2864_s16 = smul.u32 112, %s257_s13  ;;  %s3632_s20 = scalar_lea.sflag [#allocation4], %s257_s13 }
  0x45   : > { %s3624_s18 = scalar_lea.hbm %s3768_s0, %s2865_s15  ;;  %p3626_p7 = pnand %p2890_p5, %p39_p4 }
  0x46   : > { %s261_s19 = scalar_lea.vmem [#allocation3], %s2864_s16  ;;  %s3388_s21 = scalar_lea.hbm %s3624_s18, 1792 }
  0x47   : > { %s269_s11 = sshll.u32 %s261_s19, 4  ;;  %p3389_p10 = scmp.ne.s32.totalorder %s3624_s18, %s3388_s21  ;;  %s3630_s11 = int_to_ptr.vmem [resolvable:$true] %s269_s11 }
  0x48   : > { %p3390_p11 = pneg %p3626_p7  ;;  %s3393_s25 = scalar_lea.hbm %s3768_s0, 3584 }
  0x49   : > { %p3394_p0 = scmp.lt.u32.totalorder %s3624_s18, %s3768_s0  ;;  %p3395_p2 = scmp.lt.u32.totalorder %s3393_s25, %s3388_s21 }
  0x4a   : > { %p3391_p12 = pnand %p3390_p11, %p3389_p10  ;;  %p3397_p6 = scmp.lt.u32.totalorder %s3388_s21, %s3624_s18 }
  0x4b   : > { %p3396_p3 = por %p3395_p2, %p3394_p0 }
  0x4c   : > { %p3392_p13 = pneg %p3391_p12 }
  0x4d   : > { %p3398_p9 = por %p3397_p6, %p3396_p3 }
  0x4f   : > { %p3399_p8 = pnand %p3398_p9, %p3392_p13 }
  0x51   : > { %3402 = shalt.err (!%p3399_p8)
}
  0x52   : > { %s3403_s13 = scalar_lea.vmem %s3630_s11, 1792  ;;  %s3464_s16 = smov [#allocation3]  }
  0x53   : > { %p3404_p1 = scmp.ne.s32.totalorder %s3630_s11, %s3403_s13  ;;  %s3408_s12 = sshll.u32 %s3464_s16, 4  ;;  %s3409_s12 = int_to_ptr.vmem [resolvable:$false] %s3408_s12 }
  0x54   : > { %s3410_s17 = scalar_lea.vmem %s3409_s12, 3584  ;;  %p3411_p10 = scmp.lt.s32.totalorder %s3630_s11, %s3409_s12 }
  0x55   : > { %p3406_p4 = pnand %p3404_p1, %p3390_p11  ;;  %p3412_p12 = scmp.lt.s32.totalorder %s3410_s17, %s3403_s13 }
  0x57   : > { %p3407_p5 = pneg %p3406_p4  ;;  %p3413_p0 = por %p3412_p12, %p3411_p10 }
  0x59   : > { %p3414_p2 = pnand %p3413_p0, %p3407_p5 }
  0x5b   : > { %3417 = shalt.err (!%p3414_p2)
}
  0x5c   : > { %s3465_s19 = smov 896   ;;  %s3466_s21 = smov 56  }
  0x5d   : > { %2887 = dma.hbm_to_vmem [thread:$0]  (!%p3626_p7), %s3624_s18, 1792, %s3630_s11, %s3632_s20, %s3465_s19, %s3465_s19, %s3466_s21  }
  0x5e   : > { %p3785_p11 = scmp.ne.s32.totalorder %s3782_s9, 0 }
  0x5f   : > { %s283_s22 = sand.u32 (!%p3785_p11), 1, %s3448_s27   ;;  %p3786_p13 = scmp.ne.s32.totalorder (!%p3785_p11), %s3781_s8, 0 }
  0x60   : > { %281 = sbr.rel (%p3785_p11) target bundleno = 998 (0x3e6), region = 48  ;;  %s284_s25 = scalar_lea.sflag (!%p3785_p11), [#allocation4], %s283_s22 }
  0x61   : > { %s2866_s23 = smul.u32 (!%p3785_p11), 112, %s283_s22 }
  0x63   : > { %s3663_s26 = scalar_lea.vmem (!%p3785_p11), [#allocation3], %s2866_s23 }
  0x67   : > { %3435 = dma.done.wait (%p3786_p13), %s284_s25, 1792  }
  0x68   : > { %3437 = vsyncadd (%p3786_p13), %s284_s25, 4294965504  ;;  %p3787_p3 = scmp.ne.s32.totalorder %s3780_s30, 0 }
  0x6a   : > { %3439 = dma.done.wait (%p3787_p3), [#allocation6], 33280  }
  0x6b   : > { %3441 = vsyncadd (%p3787_p3), [#allocation6], 4294934016  ;;  %v2934_v1 = vld [vmem:[#allocation5 + $0x4] ss:$16 sps:$4 sm:$0xff]   ;;  %v2938_v3 = vld [vmem:[#allocation5] ss:$16 sps:$4 sm:$0xff]  }
  0x6c   : > { %v2936_v2 = vld [vmem:[#allocation5 + $0x204] ss:$16 sps:$4 sm:$0xff]   ;;  %1557 = vmatprep.subr.bf16.mxu1 %v2934_v1  ;;  %v2939_v4 = vld [vmem:[#allocation5 + $0x200] ss:$16 sps:$4 sm:$0xff]   ;;  %v335_v47 = vld [vmem:[%s3663_s26 + $0x8] sm:$0xff]  ;;  %vm1553_vm0 = vcmask 130048  }
  0x6d   : > { %1600 = vmatprep.subr.bf16.mxu0 %v2936_v2  ;;  %v2940_v5 = vld [vmem:[#allocation5 + $0x24] ss:$16 sps:$4 sm:$0xff]   ;;  %1558 = vmatpush1.bf16.msra.mxu1 %v2938_v3  ;;  %v2944_v7 = vld [vmem:[#allocation5 + $0x20] ss:$16 sps:$4 sm:$0xff]   ;;  %v337_v52 = vld [vmem:[%s3663_s26 + $0x18] sm:$0xff]  ;;  %s2555_s20 = sshll.u32 %s2543_s6, 1 }
  0x6e   : > { %1601 = vmatpush1.bf16.msra.mxu0 %v2939_v4  ;;  %v2942_v6 = vld [vmem:[#allocation5 + $0x224] ss:$16 sps:$4 sm:$0xff]   ;;  %1559 = vmatprep.subr.bf16.mxu1 %v2940_v5  ;;  %v2945_v8 = vld [vmem:[#allocation5 + $0x220] ss:$16 sps:$4 sm:$0xff]   ;;  %p328_p7 = scmp.lt.s32.totalorder %s2555_s20, 3  ;;  %vm2454_vm1 = vcmask 7168  }
  0x6f   : > { %1602 = vmatprep.subr.bf16.mxu0 %v2942_v6  ;;  %v2946_v9 = vld [vmem:[#allocation5 + $0x44] ss:$16 sps:$4 sm:$0xff]   ;;  %v2950_v11 = vld [vmem:[#allocation5 + $0x40] ss:$16 sps:$4 sm:$0xff]  }
  0x70   : > { %v2948_v10 = vld [vmem:[#allocation5 + $0x244] ss:$16 sps:$4 sm:$0xff]   ;;  %v2951_v12 = vld [vmem:[#allocation5 + $0x240] ss:$16 sps:$4 sm:$0xff]   ;;  %s3793_s20 = smov (!%p328_p7, %s2555_s20), 3 }
  0x71   : > { %1560 = vmatpush1.bf16.msra.mxu1 %v2944_v7  ;;  %v2952_v13 = vld [vmem:[#allocation5 + $0x64] ss:$16 sps:$4 sm:$0xff]   ;;  %v2956_v15 = vld [vmem:[#allocation5 + $0x60] ss:$16 sps:$4 sm:$0xff]   ;;  %s2556_s15 = sshll.u32 %s3793_s20, 3 }
  0x72   : > { %1603 = vmatpush1.bf16.msra.mxu0 %v2945_v8  ;;  %1561 = vmatprep.subr.bf16.mxu1 %v2946_v9  ;;  %v2954_v14 = vld [vmem:[#allocation5 + $0x264] ss:$16 sps:$4 sm:$0xff]   ;;  %v2957_v16 = vld [vmem:[#allocation5 + $0x260] ss:$16 sps:$4 sm:$0xff]   ;;  %v341_v8 = vld [vmem:[%s3663_s26 + $0x38] sm:$0xff]  ;;  %s331_s12 = scalar_lea.vmem %s3775_s7, %s2556_s15 }
  0x73   : > { %1604 = vmatprep.subr.bf16.mxu0 %v2948_v10  ;;  %v2958_v17 = vld [vmem:[#allocation5 + $0x84] ss:$16 sps:$4 sm:$0xff]   ;;  %v2962_v19 = vld [vmem:[#allocation5 + $0x80] ss:$16 sps:$4 sm:$0xff]  }
  0x74   : > { %v2960_v18 = vld [vmem:[#allocation5 + $0x284] ss:$16 sps:$4 sm:$0xff]   ;;  %v2963_v20 = vld [vmem:[#allocation5 + $0x280] ss:$16 sps:$4 sm:$0xff]  }
  0x75   : > { %1562 = vmatpush1.bf16.msra.mxu1 %v2950_v11  ;;  %v2964_v21 = vld [vmem:[#allocation5 + $0xa4] ss:$16 sps:$4 sm:$0xff]   ;;  %v2968_v23 = vld [vmem:[#allocation5 + $0xa0] ss:$16 sps:$4 sm:$0xff]   ;;  %v343_v11 = vld [vmem:[%s3663_s26 + $0x48] sm:$0xff] }
  0x76   : > { %1605 = vmatpush1.bf16.msra.mxu0 %v2951_v12  ;;  %1563 = vmatprep.subr.bf16.mxu1 %v2952_v13  ;;  %v2966_v22 = vld [vmem:[#allocation5 + $0x2a4] ss:$16 sps:$4 sm:$0xff]   ;;  %v2969_v24 = vld [vmem:[#allocation5 + $0x2a0] ss:$16 sps:$4 sm:$0xff]   ;;  %v3035_v12 = vld [vmem:[#allocation5 + $0xc] ss:$16 sps:$4 sm:$0xff]  }
  0x77   : > { %1606 = vmatprep.subr.bf16.mxu0 %v2954_v14  ;;  %v2970_v25 = vld [vmem:[#allocation5 + $0xc4] ss:$16 sps:$4 sm:$0xff]   ;;  %v2974_v27 = vld [vmem:[#allocation5 + $0xc0] ss:$16 sps:$4 sm:$0xff]  }
  0x78   : > { %v2972_v26 = vld [vmem:[#allocation5 + $0x2c4] ss:$16 sps:$4 sm:$0xff]   ;;  %v2975_v28 = vld [vmem:[#allocation5 + $0x2c0] ss:$16 sps:$4 sm:$0xff]  }
  0x79   : > { %1564 = vmatpush1.bf16.msra.mxu1 %v2956_v15  ;;  %v2976_v29 = vld [vmem:[#allocation5 + $0xe4] ss:$16 sps:$4 sm:$0xff]   ;;  %v2980_v31 = vld [vmem:[#allocation5 + $0xe0] ss:$16 sps:$4 sm:$0xff]   ;;  %v3033_v15 = vld [vmem:[#allocation5 + $0x8] ss:$16 sps:$4 sm:$0xff]  }
  0x7a   : > { %1607 = vmatpush1.bf16.msra.mxu0 %v2957_v16  ;;  %1565 = vmatprep.subr.bf16.mxu1 %v2958_v17  ;;  %v2978_v30 = vld [vmem:[#allocation5 + $0x2e4] ss:$16 sps:$4 sm:$0xff]   ;;  %v2981_v32 = vld [vmem:[#allocation5 + $0x2e0] ss:$16 sps:$4 sm:$0xff]  }
  0x7b   : > { %1608 = vmatprep.subr.bf16.mxu0 %v2960_v18  ;;  %v2982_v33 = vld [vmem:[#allocation5 + $0x104] ss:$16 sps:$4 sm:$0xff]   ;;  %v2986_v35 = vld [vmem:[#allocation5 + $0x100] ss:$16 sps:$4 sm:$0xff]   ;;  %v3041_v18 = vld [vmem:[#allocation5 + $0x2c] ss:$16 sps:$4 sm:$0xff]  }
  0x7c   : > { %v2984_v34 = vld [vmem:[#allocation5 + $0x304] ss:$16 sps:$4 sm:$0xff]   ;;  %v2987_v36 = vld [vmem:[#allocation5 + $0x300] ss:$16 sps:$4 sm:$0xff]  }
  0x7d   : > { %1566 = vmatpush1.bf16.msra.mxu1 %v2962_v19  ;;  %v2988_v37 = vld [vmem:[#allocation5 + $0x124] ss:$16 sps:$4 sm:$0xff]   ;;  %v2992_v39 = vld [vmem:[#allocation5 + $0x120] ss:$16 sps:$4 sm:$0xff]  }
  0x7e   : > { %1609 = vmatpush1.bf16.msra.mxu0 %v2963_v20  ;;  %1567 = vmatprep.subr.bf16.mxu1 %v2964_v21  ;;  %v2990_v38 = vld [vmem:[#allocation5 + $0x324] ss:$16 sps:$4 sm:$0xff]   ;;  %v2993_v40 = vld [vmem:[#allocation5 + $0x320] ss:$16 sps:$4 sm:$0xff]   ;;  %v3039_v20 = vld [vmem:[#allocation5 + $0x28] ss:$16 sps:$4 sm:$0xff]  }
  0x7f   : > { %1610 = vmatprep.subr.bf16.mxu0 %v2966_v22  ;;  %v2994_v41 = vld [vmem:[#allocation5 + $0x144] ss:$16 sps:$4 sm:$0xff]   ;;  %v2998_v43 = vld [vmem:[#allocation5 + $0x140] ss:$16 sps:$4 sm:$0xff]   ;;  %v3047_v22 = vld [vmem:[#allocation5 + $0x4c] ss:$16 sps:$4 sm:$0xff]  }
  0x80   : > { %v2996_v42 = vld [vmem:[#allocation5 + $0x344] ss:$16 sps:$4 sm:$0xff]   ;;  %v2999_v44 = vld [vmem:[#allocation5 + $0x340] ss:$16 sps:$4 sm:$0xff]  }
  0x81   : > { %1568 = vmatpush1.bf16.msra.mxu1 %v2968_v23  ;;  %v3000_v45 = vld [vmem:[#allocation5 + $0x164] ss:$16 sps:$4 sm:$0xff]   ;;  %v3004_v48 = vld [vmem:[#allocation5 + $0x160] ss:$16 sps:$4 sm:$0xff]  }
  0x82   : > { %1611 = vmatpush1.bf16.msra.mxu0 %v2969_v24  ;;  %1569 = vmatprep.subr.bf16.mxu1 %v2970_v25  ;;  %v3002_v46 = vld [vmem:[#allocation5 + $0x364] ss:$16 sps:$4 sm:$0xff]   ;;  %v3005_v49 = vld [vmem:[#allocation5 + $0x360] ss:$16 sps:$4 sm:$0xff]   ;;  %v3045_v24 = vld [vmem:[#allocation5 + $0x48] ss:$16 sps:$4 sm:$0xff]  }
  0x83   : > { %1612 = vmatprep.subr.bf16.mxu0 %v2972_v26  ;;  %v342_v50 = vld [vmem:[%s3663_s26 + $0x40] sm:$0xff]  ;;  %v344_v53 = vld [vmem:[%s3663_s26 + $0x50] sm:$0xff]  ;;  %v3053_v26 = vld [vmem:[#allocation5 + $0x6c] ss:$16 sps:$4 sm:$0xff]  }
  0x84   : > { %v3675_v51 = vpack.c.bf16 %v342_v50, %v335_v47  ;;  %v3006_v54 = vld [vmem:[#allocation5 + $0x184] ss:$16 sps:$4 sm:$0xff]   ;;  %v3679_v56 = vpack.c.bf16 %v344_v53, %v337_v52  ;;  %v3010_v57 = vld [vmem:[#allocation5 + $0x180] ss:$16 sps:$4 sm:$0xff]   ;;  %v3075_v47 = vld [vmem:[#allocation5 + $0xe8] ss:$16 sps:$4 sm:$0xff]  }
  0x85   : > { %1570 = vmatpush1.bf16.msra.mxu1 %v2974_v27  ;;  %v3008_v55 = vld [vmem:[#allocation5 + $0x384] ss:$16 sps:$4 sm:$0xff]   ;;  %v3011_v58 = vld [vmem:[#allocation5 + $0x380] ss:$16 sps:$4 sm:$0xff]   ;;  %v3089_v53 = vld [vmem:[#allocation5 + $0x12c] ss:$16 sps:$4 sm:$0xff]  }
  0x86   : > { %1613 = vmatpush1.bf16.msra.mxu0 %v2975_v28  ;;  %1571 = vmatprep.subr.bf16.mxu1 %v2976_v29  ;;  %v3012_v59 = vld [vmem:[#allocation5 + $0x1a4] ss:$16 sps:$4 sm:$0xff]   ;;  %v3016_v61 = vld [vmem:[#allocation5 + $0x1a0] ss:$16 sps:$4 sm:$0xff]   ;;  %v3051_v28 = vld [vmem:[#allocation5 + $0x68] ss:$16 sps:$4 sm:$0xff]  }
  0x87   : > { %1614 = vmatprep.subr.bf16.mxu0 %v2978_v30  ;;  %1589 = vmatprep.mubr.bf16.mxu1 %v3675_v51  ;;  %v3014_v60 = vld [vmem:[#allocation5 + $0x3a4] ss:$16 sps:$4 sm:$0xff]   ;;  %v3017_v62 = vld [vmem:[#allocation5 + $0x3a0] ss:$16 sps:$4 sm:$0xff]   ;;  %v3059_v30 = vld [vmem:[#allocation5 + $0x8c] ss:$16 sps:$4 sm:$0xff]  }
  0x88   : > { %1632 = vmatprep.mubr.bf16.mxu0 %v3679_v56  ;;  %v3018_v63 = vld [vmem:[#allocation5 + $0x1c4] ss:$16 sps:$4 sm:$0xff]   ;;  %v3022_v1 = vld [vmem:[#allocation5 + $0x1c0] ss:$16 sps:$4 sm:$0xff]  }
  0x89   : > { %1572 = vmatpush1.bf16.msra.mxu1 %v2980_v31  ;;  %v3020_v0 = vld [vmem:[#allocation5 + $0x3c4] ss:$16 sps:$4 sm:$0xff]   ;;  %v3023_v2 = vld [vmem:[#allocation5 + $0x3c0] ss:$16 sps:$4 sm:$0xff]  }
  0x8a   : > { %1615 = vmatpush1.bf16.msra.mxu0 %v2981_v32  ;;  %1573 = vmatprep.subr.bf16.mxu1 %v2982_v33  ;;  %v3024_v3 = vld [vmem:[#allocation5 + $0x1e4] ss:$16 sps:$4 sm:$0xff]   ;;  %v3028_v5 = vld [vmem:[#allocation5 + $0x1e0] ss:$16 sps:$4 sm:$0xff]   ;;  %v3057_v32 = vld [vmem:[#allocation5 + $0x88] ss:$16 sps:$4 sm:$0xff]  }
  0x8b   : > { %1616 = vmatprep.subr.bf16.mxu0 %v2984_v34  ;;  %v3026_v4 = vld [vmem:[#allocation5 + $0x3e4] ss:$16 sps:$4 sm:$0xff]   ;;  %v3029_v6 = vld [vmem:[#allocation5 + $0x3e0] ss:$16 sps:$4 sm:$0xff]   ;;  %v3065_v34 = vld [vmem:[#allocation5 + $0xac] ss:$16 sps:$4 sm:$0xff]  }
  0x8c   : > { %v334_v7 = vld [vmem:[%s3663_s26] sm:$0xff]  ;;  %v336_v10 = vld [vmem:[%s3663_s26 + $0x10] sm:$0xff] }
  0x8d   : > { %1574 = vmatpush1.bf16.msra.mxu1 %v2986_v35  ;;  %v3032_v9 = vld [vmem:[#allocation5 + $0x404] ss:$16 sps:$4 sm:$0xff]   ;;  %v3687_v13 = vpack.c.bf16 %v341_v8, %v334_v7  ;;  %v3030_v14 = vld [vmem:[#allocation5 + $0x400] ss:$16 sps:$4 sm:$0xff]   ;;  %v3689_v16 = vpack.c.bf16 %v343_v11, %v336_v10  ;;  %v3111_v8 = vld [vmem:[#allocation5 + $0x1a8] ss:$16 sps:$4 sm:$0xff]  }
  0x8e   : > { %1617 = vmatpush1.bf16.msra.mxu0 %v2987_v36  ;;  %1575 = vmatprep.subr.bf16.mxu1 %v2988_v37  ;;  %v3038_v17 = vld [vmem:[#allocation5 + $0x424] ss:$16 sps:$4 sm:$0xff]   ;;  %v3036_v19 = vld [vmem:[#allocation5 + $0x420] ss:$16 sps:$4 sm:$0xff]   ;;  %v3063_v36 = vld [vmem:[#allocation5 + $0xa8] ss:$16 sps:$4 sm:$0xff]  }
  0x8f   : > { %1618 = vmatprep.subr.bf16.mxu0 %v2990_v38  ;;  %v3044_v21 = vld [vmem:[#allocation5 + $0x444] ss:$16 sps:$4 sm:$0xff]   ;;  %v3042_v23 = vld [vmem:[#allocation5 + $0x440] ss:$16 sps:$4 sm:$0xff]   ;;  %v3071_v38 = vld [vmem:[#allocation5 + $0xcc] ss:$16 sps:$4 sm:$0xff]  }
  0x90   : > { %v3050_v25 = vld [vmem:[#allocation5 + $0x464] ss:$16 sps:$4 sm:$0xff]   ;;  %v3048_v27 = vld [vmem:[#allocation5 + $0x460] ss:$16 sps:$4 sm:$0xff]   ;;  %v3119_v10 = vld [vmem:[#allocation5 + $0x1cc] ss:$16 sps:$4 sm:$0xff]  }
  0x91   : > { %1576 = vmatpush1.bf16.msra.mxu1 %v2992_v39  ;;  %v3056_v29 = vld [vmem:[#allocation5 + $0x484] ss:$16 sps:$4 sm:$0xff]   ;;  %v3054_v31 = vld [vmem:[#allocation5 + $0x480] ss:$16 sps:$4 sm:$0xff]  }
  0x92   : > { %1619 = vmatpush1.bf16.msra.mxu0 %v2993_v40  ;;  %1577 = vmatprep.subr.bf16.mxu1 %v2994_v41  ;;  %v3062_v33 = vld [vmem:[#allocation5 + $0x4a4] ss:$16 sps:$4 sm:$0xff]   ;;  %v3060_v35 = vld [vmem:[#allocation5 + $0x4a0] ss:$16 sps:$4 sm:$0xff]   ;;  %v3069_v40 = vld [vmem:[#allocation5 + $0xc8] ss:$16 sps:$4 sm:$0xff]  }
  0x93   : > { %1620 = vmatprep.subr.bf16.mxu0 %v2996_v42  ;;  %v3068_v37 = vld [vmem:[#allocation5 + $0x4c4] ss:$16 sps:$4 sm:$0xff]   ;;  %v3066_v39 = vld [vmem:[#allocation5 + $0x4c0] ss:$16 sps:$4 sm:$0xff]   ;;  %v339_v42 = vld [vmem:[%s3663_s26 + $0x28] sm:$0xff] }
  0x94   : > { %v3074_v41 = vld [vmem:[#allocation5 + $0x4e4] ss:$16 sps:$4 sm:$0xff]   ;;  %v3078_v50 = vld [vmem:[#allocation5 + $0x500] ss:$16 sps:$4 sm:$0xff]  }
  0x95   : > { %1578 = vmatpush1.bf16.msra.mxu1 %v2998_v43  ;;  %v346_v43 = vld [vmem:[%s3663_s26 + $0x60] sm:$0xff] }
  0x96   : > { %1621 = vmatpush1.bf16.msra.mxu0 %v2999_v44  ;;  %1579 = vmatprep.subr.bf16.mxu1 %v3000_v45  ;;  %v3077_v44 = vld [vmem:[#allocation5 + $0xec] ss:$16 sps:$4 sm:$0xff]   ;;  %v3696_v45 = vpack.c.bf16 %v346_v43, %v339_v42  ;;  %v3086_v52 = vld [vmem:[#allocation5 + $0x524] ss:$16 sps:$4 sm:$0xff]   ;;  %v3108_v7 = vld [vmem:[#allocation5 + $0x5a0] ss:$16 sps:$4 sm:$0xff]  }
  0x97   : > { %1622 = vmatprep.subr.bf16.mxu0 %v3002_v46  ;;  %v3072_v46 = vld [vmem:[#allocation5 + $0x4e0] ss:$16 sps:$4 sm:$0xff]   ;;  %v3230_v42 = vld [vmem:[#allocation7 + $0x4] ss:$8 sps:$4 sm:$0xff]   ;;  %v3233_v43 = vld [vmem:[#allocation7 + $0x14] ss:$8 sps:$4 sm:$0xff]  }
  0x98   : > { %v3114_v11 = vld [vmem:[#allocation5 + $0x5c0] ss:$16 sps:$4 sm:$0xff]  }
  0x99   : > { %1580 = vmatpush1.bf16.msra.mxu1 %v3004_v48  ;;  %v3080_v48 = vld [vmem:[#allocation5 + $0x504] ss:$16 sps:$4 sm:$0xff]  }
  0x9a   : > { %1623 = vmatpush1.bf16.msra.mxu0 %v3005_v49  ;;  %1581 = vmatprep.subr.bf16.mxu1 %v3006_v54  ;;  %v3083_v49 = vld [vmem:[#allocation5 + $0x10c] ss:$16 sps:$4 sm:$0xff]   ;;  %v3084_v54 = vld [vmem:[#allocation5 + $0x520] ss:$16 sps:$4 sm:$0xff]  }
  0x9b   : > { %1624 = vmatprep.subr.bf16.mxu0 %v3008_v55  ;;  %v3087_v55 = vld [vmem:[#allocation5 + $0x128] ss:$16 sps:$4 sm:$0xff]  }
  0x9d   : > { %1582 = vmatpush1.bf16.msra.mxu1 %v3010_v57  ;;  %v3092_v57 = vld [vmem:[#allocation5 + $0x544] ss:$16 sps:$4 sm:$0xff]  }
  0x9e   : > { %1625 = vmatpush1.bf16.msra.mxu0 %v3011_v58  ;;  %1583 = vmatprep.subr.bf16.mxu1 %v3012_v59  ;;  %v3095_v58 = vld [vmem:[#allocation5 + $0x14c] ss:$16 sps:$4 sm:$0xff]   ;;  %v3090_v59 = vld [vmem:[#allocation5 + $0x540] ss:$16 sps:$4 sm:$0xff]  }
  0x9f   : > { %1626 = vmatprep.subr.bf16.mxu0 %v3014_v60  ;;  %v3093_v60 = vld [vmem:[#allocation5 + $0x148] ss:$16 sps:$4 sm:$0xff]  }
  0xa1   : > { %1584 = vmatpush1.bf16.msra.mxu1 %v3016_v61  ;;  %v3098_v61 = vld [vmem:[#allocation5 + $0x564] ss:$16 sps:$4 sm:$0xff]  }
  0xa2   : > { %1627 = vmatpush1.bf16.msra.mxu0 %v3017_v62  ;;  %1585 = vmatprep.subr.bf16.mxu1 %v3018_v63  ;;  %v3101_v62 = vld [vmem:[#allocation5 + $0x16c] ss:$16 sps:$4 sm:$0xff]   ;;  %v3096_v63 = vld [vmem:[#allocation5 + $0x560] ss:$16 sps:$4 sm:$0xff]  }
  0xa3   : > { %1628 = vmatprep.subr.bf16.mxu0 %v3020_v0  ;;  %v3099_v0 = vld [vmem:[#allocation5 + $0x168] ss:$16 sps:$4 sm:$0xff]  }
  0xa5   : > { %1586 = vmatpush1.bf16.msra.mxu1 %v3022_v1  ;;  %v3104_v1 = vld [vmem:[#allocation5 + $0x584] ss:$16 sps:$4 sm:$0xff]  }
  0xa6   : > { %1629 = vmatpush1.bf16.msra.mxu0 %v3023_v2  ;;  %1587 = vmatprep.subr.bf16.mxu1 %v3024_v3  ;;  %v3107_v2 = vld [vmem:[#allocation5 + $0x18c] ss:$16 sps:$4 sm:$0xff]   ;;  %v3102_v3 = vld [vmem:[#allocation5 + $0x580] ss:$16 sps:$4 sm:$0xff]  }
  0xa7   : > { %1630 = vmatprep.subr.bf16.mxu0 %v3026_v4  ;;  %v3105_v4 = vld [vmem:[#allocation5 + $0x188] ss:$16 sps:$4 sm:$0xff]  }
  0xa9   : > { %1588 = vmatpush1.bf16.msra.mxu1 %v3028_v5  ;;  %v3110_v5 = vld [vmem:[#allocation5 + $0x5a4] ss:$16 sps:$4 sm:$0xff]  }
  0xaa   : > { %1631 = vmatpush1.bf16.msra.mxu0 %v3029_v6  ;;  %1729 = vmatprep.subr.bf16.mxu1 %v3035_v12  ;;  %v3113_v6 = vld [vmem:[#allocation5 + $0x1ac] ss:$16 sps:$4 sm:$0xff]   ;;  %v3117_v12 = vld [vmem:[#allocation5 + $0x1c8] ss:$16 sps:$4 sm:$0xff]  }
  0xab   : > { %1643 = vmatprep.subr.bf16.mxu0 %v3032_v9  ;;  %v3116_v9 = vld [vmem:[#allocation5 + $0x5c4] ss:$16 sps:$4 sm:$0xff]  }
  0xac   : > { %1590 = vmatmul.mubr.bf16.vlgmr.msra.gmra.mrb[0].mxu1 %v3687_v13 }
  0xad   : > { %1633 = vmatmul.mubr.bf16.vlgmr.msra.gmra.mrb[0].mxu0 %v3689_v16  ;;  %1730 = vmatpush1.bf16.msra.mxu1 %v3033_v15  ;;  %v3125_v15 = vld [vmem:[#allocation5 + $0x1ec] ss:$16 sps:$4 sm:$0xff]  }
  0xae   : > { %1644 = vmatpush1.bf16.msra.mxu0 %v3030_v14  ;;  %1731 = vmatprep.subr.bf16.mxu1 %v3041_v18  ;;  %v3122_v14 = vld [vmem:[#allocation5 + $0x5e4] ss:$16 sps:$4 sm:$0xff]   ;;  %v3123_v18 = vld [vmem:[#allocation5 + $0x1e8] ss:$16 sps:$4 sm:$0xff]  }
  0xaf   : > { %1645 = vmatprep.subr.bf16.mxu0 %v3038_v17  ;;  %1761 = vmatprep.mubr.bf16.mxu1 %v3675_v51  ;;  %v3081_v51 = vld [vmem:[#allocation5 + $0x108] ss:$16 sps:$4 sm:$0xff]   ;;  %v3120_v17 = vld [vmem:[#allocation5 + $0x5e0] ss:$16 sps:$4 sm:$0xff]  }
  0xb0   : > { %1675 = vmatprep.mubr.bf16.mxu0 %v3696_v45 }
  0xb1   : > { %1732 = vmatpush1.bf16.msra.mxu1 %v3039_v20  ;;  %v345_v20 = vld [vmem:[%s3663_s26 + $0x58] sm:$0xff] }
  0xb2   : > { %1646 = vmatpush1.bf16.msra.mxu0 %v3036_v19  ;;  %1733 = vmatprep.subr.bf16.mxu1 %v3047_v22  ;;  %v338_v19 = vld [vmem:[%s3663_s26 + $0x20] sm:$0xff] }
  0xb3   : > { %1647 = vmatprep.subr.bf16.mxu0 %v3044_v21  ;;  %v3128_v21 = vld [vmem:[#allocation5 + $0x20c] ss:$16 sps:$4 sm:$0xff]   ;;  %v3134_v22 = vld [vmem:[#allocation5 + $0x604] ss:$16 sps:$4 sm:$0xff]  }
  0xb5   : > { %1734 = vmatpush1.bf16.msra.mxu1 %v3045_v24  ;;  %v3126_v24 = vld [vmem:[#allocation5 + $0x208] ss:$16 sps:$4 sm:$0xff]  }
  0xb6   : > { %1648 = vmatpush1.bf16.msra.mxu0 %v3042_v23  ;;  %1735 = vmatprep.subr.bf16.mxu1 %v3053_v26  ;;  %v3701_v23 = vpack.c.bf16 %v345_v20, %v338_v19  ;;  %v3131_v26 = vld [vmem:[#allocation5 + $0x22c] ss:$16 sps:$4 sm:$0xff]   ;;  %v3177_v20 = vld [vmem:[#allocation5 + $0x408] ss:$16 sps:$4 sm:$0xff]  }
  0xb7   : > { %1649 = vmatprep.subr.bf16.mxu0 %v3050_v25  ;;  %v3132_v25 = vld [vmem:[#allocation5 + $0x600] ss:$16 sps:$4 sm:$0xff]   ;;  %v3260_v19 = vld [vmem:[#allocation7 + $0xa4] ss:$8 sps:$4 sm:$0xff]  }
  0xb9   : > { %1736 = vmatpush1.bf16.msra.mxu1 %v3051_v28  ;;  %v3137_v28 = vld [vmem:[#allocation5 + $0x24c] ss:$16 sps:$4 sm:$0xff]  }
  0xba   : > { %1650 = vmatpush1.bf16.msra.mxu0 %v3048_v27  ;;  %1737 = vmatprep.subr.bf16.mxu1 %v3059_v30  ;;  %v3129_v27 = vld [vmem:[#allocation5 + $0x228] ss:$16 sps:$4 sm:$0xff]  }
  0xbb   : > { %1651 = vmatprep.subr.bf16.mxu0 %v3056_v29  ;;  %v3467_v29 = vmov 0   ;;  %v3135_v30 = vld [vmem:[#allocation5 + $0x248] ss:$16 sps:$4 sm:$0xff]  }
  0xbd   : > { %1738 = vmatpush1.bf16.msra.mxu1 %v3057_v32  ;;  %v347_v32 = vld [vmem:[%s3663_s26 + $0x68] sm:$0xff] }
  0xbe   : > { %1652 = vmatpush1.bf16.msra.mxu0 %v3054_v31  ;;  %1739 = vmatprep.subr.bf16.mxu1 %v3065_v34  ;;  %v340_v31 = vld [vmem:[%s3663_s26 + $0x30] sm:$0xff]  ;;  %v3138_v34 = vld [vmem:[#allocation5 + $0x268] ss:$16 sps:$4 sm:$0xff]  }
  0xbf   : > { %1653 = vmatprep.subr.bf16.mxu0 %v3062_v33  ;;  %v3140_v33 = vld [vmem:[#allocation5 + $0x26c] ss:$16 sps:$4 sm:$0xff]  }
  0xc1   : > { %1740 = vmatpush1.bf16.msra.mxu1 %v3063_v36  ;;  %v3141_v36 = vld [vmem:[#allocation5 + $0x288] ss:$16 sps:$4 sm:$0xff]  }
  0xc2   : > { %1654 = vmatpush1.bf16.msra.mxu0 %v3060_v35  ;;  %1741 = vmatprep.subr.bf16.mxu1 %v3071_v38  ;;  %v3709_v35 = vpack.c.bf16 %v347_v32, %v340_v31  ;;  %v3144_v38 = vld [vmem:[#allocation5 + $0x2a8] ss:$16 sps:$4 sm:$0xff]   ;;  %v3188_v31 = vld [vmem:[#allocation5 + $0x46c] ss:$16 sps:$4 sm:$0xff]  }
  0xc3   : > { %1655 = vmatprep.subr.bf16.mxu0 %v3068_v37  ;;  %v3146_v37 = vld [vmem:[#allocation5 + $0x2ac] ss:$16 sps:$4 sm:$0xff]   ;;  %v3264_v32 = vld [vmem:[#allocation7 + $0xc0] ss:$8 sps:$4 sm:$0xff]  }
  0xc5   : > { %1742 = vmatpush1.bf16.msra.mxu1 %v3069_v40  ;;  %v3152_v40 = vld [vmem:[#allocation5 + $0x2ec] ss:$16 sps:$4 sm:$0xff]  }
  0xc6   : > { %1656 = vmatpush1.bf16.msra.mxu0 %v3066_v39  ;;  %1743 = vmatprep.subr.bf16.mxu1 %v3077_v44  ;;  %v3149_v39 = vld [vmem:[#allocation5 + $0x2cc] ss:$16 sps:$4 sm:$0xff]   ;;  %v3150_v44 = vld [vmem:[#allocation5 + $0x2e8] ss:$16 sps:$4 sm:$0xff]  }
  0xc7   : > { %1657 = vmatprep.subr.bf16.mxu0 %v3074_v41  ;;  %v3228_v41 = vld [vmem:[#allocation7] ss:$8 sps:$4 sm:$0xff]  }
  0xc9   : > { %1744 = vmatpush1.bf16.msra.mxu1 %v3075_v47  ;;  %v3231_v47 = vld [vmem:[#allocation7 + $0x10] ss:$8 sps:$4 sm:$0xff]  }
  0xca   : > { %1658 = vmatpush1.bf16.msra.mxu0 %v3072_v46  ;;  %1745 = vmatprep.subr.bf16.mxu1 %v3083_v49  ;;  %v3155_v46 = vld [vmem:[#allocation5 + $0x30c] ss:$16 sps:$4 sm:$0xff]   ;;  %v3153_v49 = vld [vmem:[#allocation5 + $0x308] ss:$16 sps:$4 sm:$0xff]  }
  0xcb   : > { %1659 = vmatprep.subr.bf16.mxu0 %v3080_v48  ;;  %v3236_v48 = vld [vmem:[#allocation7 + $0x24] ss:$8 sps:$4 sm:$0xff]  }
  0xcd   : > { %1746 = vmatpush1.bf16.msra.mxu1 %v3081_v51  ;;  %v3234_v51 = vld [vmem:[#allocation7 + $0x20] ss:$8 sps:$4 sm:$0xff]  }
  0xce   : > { %1660 = vmatpush1.bf16.msra.mxu0 %v3078_v50  ;;  %1747 = vmatprep.subr.bf16.mxu1 %v3089_v53  ;;  %v3158_v50 = vld [vmem:[#allocation5 + $0x32c] ss:$16 sps:$4 sm:$0xff]  }
  0xcf   : > { %1661 = vmatprep.subr.bf16.mxu0 %v3086_v52  ;;  %v3156_v52 = vld [vmem:[#allocation5 + $0x328] ss:$16 sps:$4 sm:$0xff]   ;;  %v3239_v53 = vld [vmem:[#allocation7 + $0x34] ss:$8 sps:$4 sm:$0xff]  }
  0xd1   : > { %1748 = vmatpush1.bf16.msra.mxu1 %v3087_v55  ;;  %v3237_v55 = vld [vmem:[#allocation7 + $0x30] ss:$8 sps:$4 sm:$0xff]  }
  0xd2   : > { %1662 = vmatpush1.bf16.msra.mxu0 %v3084_v54  ;;  %1749 = vmatprep.subr.bf16.mxu1 %v3095_v58  ;;  %v3161_v54 = vld [vmem:[#allocation5 + $0x34c] ss:$16 sps:$4 sm:$0xff]   ;;  %v3159_v58 = vld [vmem:[#allocation5 + $0x348] ss:$16 sps:$4 sm:$0xff]  }
  0xd3   : > { %1663 = vmatprep.subr.bf16.mxu0 %v3092_v57  ;;  %v3242_v57 = vld [vmem:[#allocation7 + $0x44] ss:$8 sps:$4 sm:$0xff]  }
  0xd5   : > { %1750 = vmatpush1.bf16.msra.mxu1 %v3093_v60  ;;  %v3240_v60 = vld [vmem:[#allocation7 + $0x40] ss:$8 sps:$4 sm:$0xff]  }
  0xd6   : > { %1664 = vmatpush1.bf16.msra.mxu0 %v3090_v59  ;;  %1751 = vmatprep.subr.bf16.mxu1 %v3101_v62  ;;  %v3164_v59 = vld [vmem:[#allocation5 + $0x36c] ss:$16 sps:$4 sm:$0xff]   ;;  %v3162_v62 = vld [vmem:[#allocation5 + $0x368] ss:$16 sps:$4 sm:$0xff]  }
  0xd7   : > { %1665 = vmatprep.subr.bf16.mxu0 %v3098_v61  ;;  %v3245_v61 = vld [vmem:[#allocation7 + $0x54] ss:$8 sps:$4 sm:$0xff]  }
  0xd9   : > { %1752 = vmatpush1.bf16.msra.mxu1 %v3099_v0  ;;  %v3243_v0 = vld [vmem:[#allocation7 + $0x50] ss:$8 sps:$4 sm:$0xff]  }
  0xda   : > { %1666 = vmatpush1.bf16.msra.mxu0 %v3096_v63  ;;  %1753 = vmatprep.subr.bf16.mxu1 %v3107_v2  ;;  %v3167_v63 = vld [vmem:[#allocation5 + $0x38c] ss:$16 sps:$4 sm:$0xff]   ;;  %v3165_v2 = vld [vmem:[#allocation5 + $0x388] ss:$16 sps:$4 sm:$0xff]  }
  0xdb   : > { %1667 = vmatprep.subr.bf16.mxu0 %v3104_v1  ;;  %v3248_v1 = vld [vmem:[#allocation7 + $0x64] ss:$8 sps:$4 sm:$0xff]  }
  0xdd   : > { %1754 = vmatpush1.bf16.msra.mxu1 %v3105_v4  ;;  %v3246_v4 = vld [vmem:[#allocation7 + $0x60] ss:$8 sps:$4 sm:$0xff]  }
  0xde   : > { %1668 = vmatpush1.bf16.msra.mxu0 %v3102_v3  ;;  %1755 = vmatprep.subr.bf16.mxu1 %v3113_v6  ;;  %v3170_v3 = vld [vmem:[#allocation5 + $0x3ac] ss:$16 sps:$4 sm:$0xff]   ;;  %v3168_v6 = vld [vmem:[#allocation5 + $0x3a8] ss:$16 sps:$4 sm:$0xff]  }
  0xdf   : > { %1669 = vmatprep.subr.bf16.mxu0 %v3110_v5  ;;  %v3251_v5 = vld [vmem:[#allocation7 + $0x74] ss:$8 sps:$4 sm:$0xff]  }
  0xe1   : > { %1756 = vmatpush1.bf16.msra.mxu1 %v3111_v8  ;;  %v3249_v8 = vld [vmem:[#allocation7 + $0x70] ss:$8 sps:$4 sm:$0xff]  }
  0xe2   : > { %1670 = vmatpush1.bf16.msra.mxu0 %v3108_v7  ;;  %1757 = vmatprep.subr.bf16.mxu1 %v3119_v10  ;;  %v3173_v7 = vld [vmem:[#allocation5 + $0x3cc] ss:$16 sps:$4 sm:$0xff]   ;;  %v3171_v10 = vld [vmem:[#allocation5 + $0x3c8] ss:$16 sps:$4 sm:$0xff]  }
  0xe3   : > { %1671 = vmatprep.subr.bf16.mxu0 %v3116_v9  ;;  %v3254_v9 = vld [vmem:[#allocation7 + $0x84] ss:$8 sps:$4 sm:$0xff]  }
  0xe5   : > { %1758 = vmatpush1.bf16.msra.mxu1 %v3117_v12  ;;  %v3252_v12 = vld [vmem:[#allocation7 + $0x80] ss:$8 sps:$4 sm:$0xff]  }
  0xe6   : > { %1672 = vmatpush1.bf16.msra.mxu0 %v3114_v11  ;;  %1759 = vmatprep.subr.bf16.mxu1 %v3125_v15  ;;  %v3176_v11 = vld [vmem:[#allocation5 + $0x3ec] ss:$16 sps:$4 sm:$0xff]   ;;  %v3174_v15 = vld [vmem:[#allocation5 + $0x3e8] ss:$16 sps:$4 sm:$0xff]  }
  0xe7   : > { %1673 = vmatprep.subr.bf16.mxu0 %v3122_v14  ;;  %v3257_v14 = vld [vmem:[#allocation7 + $0x94] ss:$8 sps:$4 sm:$0xff]  }
  0xe9   : > { %1760 = vmatpush1.bf16.msra.mxu1 %v3123_v18  ;;  %v3255_v18 = vld [vmem:[#allocation7 + $0x90] ss:$8 sps:$4 sm:$0xff]  }
  0xea   : > { %1674 = vmatpush1.bf16.msra.mxu0 %v3120_v17  ;;  %1772 = vmatprep.subr.bf16.mxu1 %v3128_v21  ;;  %v3179_v17 = vld [vmem:[#allocation5 + $0x40c] ss:$16 sps:$4 sm:$0xff]  }
  0xeb   : > { %1686 = vmatprep.subr.bf16.mxu0 %v3134_v22  ;;  %v3182_v21 = vld [vmem:[#allocation5 + $0x42c] ss:$16 sps:$4 sm:$0xff]   ;;  %v3258_v22 = vld [vmem:[#allocation7 + $0xa0] ss:$8 sps:$4 sm:$0xff]  }
  0xec   : > { %1762 = vmatmul.mubr.bf16.vlgmr.msra.gmra.mrb[4].mxu1 %v3687_v13  ;;  %v3143_v13 = vld [vmem:[#allocation5 + $0x28c] ss:$16 sps:$4 sm:$0xff]  }
  0xed   : > { %1676 = vmatmul.mubr.bf16.vlgmr.msra.gmra.mrb[0].mxu0 %v3701_v23  ;;  %1773 = vmatpush1.bf16.msra.mxu1 %v3126_v24  ;;  %v3263_v24 = vld [vmem:[#allocation7 + $0xb4] ss:$8 sps:$4 sm:$0xff]  }
  0xee   : > { %1687 = vmatpush1.bf16.msra.mxu0 %v3132_v25  ;;  %1774 = vmatprep.subr.bf16.mxu1 %v3131_v26  ;;  %v3180_v25 = vld [vmem:[#allocation5 + $0x428] ss:$16 sps:$4 sm:$0xff]   ;;  %v3185_v26 = vld [vmem:[#allocation5 + $0x44c] ss:$16 sps:$4 sm:$0xff]  }
  0xef   : > { %1718 = vmatprep.mubr.bf16.mxu0 %v3467_v29  ;;  %1804 = vmatprep.mubr.bf16.mxu1 %v3679_v56  ;;  %v3147_v56 = vld [vmem:[#allocation5 + $0x2c8] ss:$16 sps:$4 sm:$0xff]  }
  0xf0   : > { %2317 = vmatprep.subr.bf16.mxu0 %v3230_v42  ;;  %v3269_v42 = vld [vmem:[#allocation7 + $0xd4] ss:$8 sps:$4 sm:$0xff]  }
  0xf1   : > { %1775 = vmatpush1.bf16.msra.mxu1 %v3129_v27  ;;  %v3261_v27 = vld [vmem:[#allocation7 + $0xb0] ss:$8 sps:$4 sm:$0xff]  }
  0xf2   : > { %1776 = vmatprep.subr.bf16.mxu1 %v3137_v28  ;;  %v3266_v28 = vld [vmem:[#allocation7 + $0xc4] ss:$8 sps:$4 sm:$0xff]  }
  0xf5   : > { %1777 = vmatpush1.bf16.msra.mxu1 %v3135_v30  ;;  %v3183_v30 = vld [vmem:[#allocation5 + $0x448] ss:$16 sps:$4 sm:$0xff]  }
  0xf6   : > { %1778 = vmatprep.subr.bf16.mxu1 %v3140_v33  ;;  %v3186_v33 = vld [vmem:[#allocation5 + $0x468] ss:$16 sps:$4 sm:$0xff]  }
  0xf9   : > { %2753 = vmatmul.mubr.msk.bf16.vlgmr.msra.gmra.mrb[0].mxu0 %vm1553_vm0, %v3709_v35  ;;  %1779 = vmatpush1.bf16.msra.mxu1 %v3138_v34  ;;  %v3194_v34 = vld [vmem:[#allocation5 + $0x4ac] ss:$16 sps:$4 sm:$0xff]  }
  0xfa   : > { %1780 = vmatprep.subr.bf16.mxu1 %v3143_v13  ;;  %2318 = vmatpush1.bf16.msra.mxu0 %v3228_v41  ;;  %v3192_v13 = vld [vmem:[#allocation5 + $0x4a8] ss:$16 sps:$4 sm:$0xff]   ;;  %v3206_v41 = vld [vmem:[#allocation5 + $0x52c] ss:$16 sps:$4 sm:$0xff]  }
  0xfb   : > { %2319 = vmatprep.subr.bf16.mxu0 %v3233_v43  ;;  %v3267_v43 = vld [vmem:[#allocation7 + $0xd0] ss:$8 sps:$4 sm:$0xff]  }
  0xfd   : > { %1781 = vmatpush1.bf16.msra.mxu1 %v3141_v36  ;;  %v3197_v36 = vld [vmem:[#allocation5 + $0x4cc] ss:$16 sps:$4 sm:$0xff]  }
  0xfe   : > { %1782 = vmatprep.subr.bf16.mxu1 %v3146_v37  ;;  %2320 = vmatpush1.bf16.msra.mxu0 %v3231_v47  ;;  %v3195_v37 = vld [vmem:[#allocation5 + $0x4c8] ss:$16 sps:$4 sm:$0xff]   ;;  %v3272_v47 = vld [vmem:[#allocation7 + $0xe4] ss:$8 sps:$4 sm:$0xff]  }
  0xff   : > { %2321 = vmatprep.subr.bf16.mxu0 %v3236_v48  ;;  %v3270_v48 = vld [vmem:[#allocation7 + $0xe0] ss:$8 sps:$4 sm:$0xff]  }
 0x101   : > { %1783 = vmatpush1.bf16.msra.mxu1 %v3144_v38  ;;  %v3200_v38 = vld [vmem:[#allocation5 + $0x4ec] ss:$16 sps:$4 sm:$0xff]  }
 0x102   : > { %1784 = vmatprep.subr.bf16.mxu1 %v3149_v39  ;;  %2322 = vmatpush1.bf16.msra.mxu0 %v3234_v51  ;;  %v3198_v39 = vld [vmem:[#allocation5 + $0x4e8] ss:$16 sps:$4 sm:$0xff]   ;;  %v3275_v51 = vld [vmem:[#allocation7 + $0xf4] ss:$8 sps:$4 sm:$0xff]  }
 0x103   : > { %2323 = vmatprep.subr.bf16.mxu0 %v3239_v53  ;;  %v3210_v53 = vld [vmem:[#allocation5 + $0x568] ss:$16 sps:$4 sm:$0xff]  }
 0x105   : > { %1785 = vmatpush1.bf16.msra.mxu1 %v3147_v56  ;;  %v3203_v56 = vld [vmem:[#allocation5 + $0x50c] ss:$16 sps:$4 sm:$0xff]  }
 0x106   : > { %1786 = vmatprep.subr.bf16.mxu1 %v3152_v40  ;;  %2324 = vmatpush1.bf16.msra.mxu0 %v3237_v55  ;;  %v3201_v40 = vld [vmem:[#allocation5 + $0x508] ss:$16 sps:$4 sm:$0xff]   ;;  %v3278_v55 = vld [vmem:[#allocation7 + $0x104] ss:$8 sps:$4 sm:$0xff]  }
 0x107   : > { %2325 = vmatprep.subr.bf16.mxu0 %v3242_v57  ;;  %v3213_v57 = vld [vmem:[#allocation5 + $0x588] ss:$16 sps:$4 sm:$0xff]  }
 0x109   : > { %1787 = vmatpush1.bf16.msra.mxu1 %v3150_v44  ;;  %v3204_v44 = vld [vmem:[#allocation5 + $0x528] ss:$16 sps:$4 sm:$0xff]  }
 0x10a   : > { %1788 = vmatprep.subr.bf16.mxu1 %v3155_v46  ;;  %2326 = vmatpush1.bf16.msra.mxu0 %v3240_v60  ;;  %v3209_v46 = vld [vmem:[#allocation5 + $0x54c] ss:$16 sps:$4 sm:$0xff]  }
 0x10b   : > { %2327 = vmatprep.subr.bf16.mxu0 %v3245_v61  ;;  %v3221_v60 = vld [vmem:[#allocation5 + $0x5cc] ss:$16 sps:$4 sm:$0xff]   ;;  %v3219_v61 = vld [vmem:[#allocation5 + $0x5c8] ss:$16 sps:$4 sm:$0xff]  }
 0x10d   : > { %1789 = vmatpush1.bf16.msra.mxu1 %v3153_v49  ;;  %v3207_v49 = vld [vmem:[#allocation5 + $0x548] ss:$16 sps:$4 sm:$0xff]  }
 0x10e   : > { %1790 = vmatprep.subr.bf16.mxu1 %v3158_v50  ;;  %2328 = vmatpush1.bf16.msra.mxu0 %v3243_v0  ;;  %v3212_v50 = vld [vmem:[#allocation5 + $0x56c] ss:$16 sps:$4 sm:$0xff]  }
 0x10f   : > { %2329 = vmatprep.subr.bf16.mxu0 %v3248_v1  ;;  %v3227_v0 = vld [vmem:[#allocation5 + $0x60c] ss:$16 sps:$4 sm:$0xff]   ;;  %v3225_v1 = vld [vmem:[#allocation5 + $0x608] ss:$16 sps:$4 sm:$0xff]  }
 0x111   : > { %1791 = vmatpush1.bf16.msra.mxu1 %v3156_v52  ;;  %v3273_v52 = vld [vmem:[#allocation7 + $0xf0] ss:$8 sps:$4 sm:$0xff]  }
 0x112   : > { %1792 = vmatprep.subr.bf16.mxu1 %v3161_v54  ;;  %2330 = vmatpush1.bf16.msra.mxu0 %v3246_v4  ;;  %v3215_v54 = vld [vmem:[#allocation5 + $0x58c] ss:$16 sps:$4 sm:$0xff]  }
 0x113   : > { %2331 = vmatprep.subr.bf16.mxu0 %v3251_v5 }
 0x115   : > { %1793 = vmatpush1.bf16.msra.mxu1 %v3159_v58  ;;  %v3218_v58 = vld [vmem:[#allocation5 + $0x5ac] ss:$16 sps:$4 sm:$0xff]  }
 0x116   : > { %1794 = vmatprep.subr.bf16.mxu1 %v3164_v59  ;;  %2332 = vmatpush1.bf16.msra.mxu0 %v3249_v8  ;;  %v3216_v59 = vld [vmem:[#allocation5 + $0x5a8] ss:$16 sps:$4 sm:$0xff]  }
 0x117   : > { %2333 = vmatprep.subr.bf16.mxu0 %v3254_v9 }
 0x119   : > { %1795 = vmatpush1.bf16.msra.mxu1 %v3162_v62  ;;  %v3224_v62 = vld [vmem:[#allocation5 + $0x5ec] ss:$16 sps:$4 sm:$0xff]  }
 0x11a   : > { %1796 = vmatprep.subr.bf16.mxu1 %v3167_v63  ;;  %2334 = vmatpush1.bf16.msra.mxu0 %v3252_v12  ;;  %v3222_v63 = vld [vmem:[#allocation5 + $0x5e8] ss:$16 sps:$4 sm:$0xff]  }
 0x11b   : > { %2335 = vmatprep.subr.bf16.mxu0 %v3257_v14 }
 0x11d   : > { %1797 = vmatpush1.bf16.msra.mxu1 %v3165_v2 }
 0x11e   : > { %1798 = vmatprep.subr.bf16.mxu1 %v3170_v3  ;;  %2336 = vmatpush1.bf16.msra.mxu0 %v3255_v18 }
 0x11f   : > { %2337 = vmatprep.subr.bf16.mxu0 %v3260_v19 }
 0x121   : > { %1799 = vmatpush1.bf16.msra.mxu1 %v3168_v6  ;;  %v553_v6 = vlaneseq }
 0x122   : > { %1800 = vmatprep.subr.bf16.mxu1 %v3173_v7  ;;  %2338 = vmatpush1.bf16.msra.mxu0 %v3258_v22 }
 0x123   : > { %2339 = vmatprep.subr.bf16.mxu0 %v3263_v24  ;;  %v3719_v7 = vshrl.u32 %v553_v6, 7 }
 0x125   : > { %1801 = vmatpush1.bf16.msra.mxu1 %v3171_v10  ;;  %v3722_v8 = vsub.s32 0, %v3719_v7 }
 0x126   : > { %1802 = vmatprep.subr.bf16.mxu1 %v3176_v11  ;;  %2340 = vmatpush1.bf16.msra.mxu0 %v3261_v27 }
 0x127   : > { %2341 = vmatprep.subr.bf16.mxu0 %v3266_v28 }
 0x129   : > { %1803 = vmatpush1.bf16.msra.mxu1 %v3174_v15 }
 0x12a   : > { %1815 = vmatprep.subr.bf16.mxu1 %v3179_v17  ;;  %2342 = vmatpush1.bf16.msra.mxu0 %v3264_v32 }
 0x12b   : > { %2343 = vmatprep.subr.bf16.mxu0 %v3269_v42  ;;  %v3293_v42 = vld [vmem:[#allocation7 + $0x154] ss:$8 sps:$4 sm:$0xff]  }
 0x12c   : > { %1805 = vmatmul.mubr.bf16.vlgmr.msra.gmra.mrb[4].mxu1 %v3689_v16  ;;  %v3191_v16 = vld [vmem:[#allocation5 + $0x48c] ss:$16 sps:$4 sm:$0xff]  }
 0x12d   : > { %1816 = vmatpush1.bf16.msra.mxu1 %v3177_v20  ;;  %1847 = vmatprep.mubr.bf16.mxu1 %v3696_v45  ;;  %v3189_v45 = vld [vmem:[#allocation5 + $0x488] ss:$16 sps:$4 sm:$0xff]  }
 0x12e   : > { %1817 = vmatprep.subr.bf16.mxu1 %v3182_v21  ;;  %2344 = vmatpush1.bf16.msra.mxu0 %v3267_v43  ;;  %v3291_v43 = vld [vmem:[#allocation7 + $0x150] ss:$8 sps:$4 sm:$0xff]  }
 0x12f   : > { %2345 = vmatprep.subr.bf16.mxu0 %v3272_v47  ;;  %v3299_v47 = vld [vmem:[#allocation7 + $0x174] ss:$8 sps:$4 sm:$0xff]  }
 0x131   : > { %1818 = vmatpush1.bf16.msra.mxu1 %v3180_v25 }
 0x132   : > { %1819 = vmatprep.subr.bf16.mxu1 %v3185_v26  ;;  %2346 = vmatpush1.bf16.msra.mxu0 %v3270_v48  ;;  %v3297_v48 = vld [vmem:[#allocation7 + $0x170] ss:$8 sps:$4 sm:$0xff]  }
 0x133   : > { %2347 = vmatprep.subr.bf16.mxu0 %v3275_v51  ;;  %v3305_v51 = vld [vmem:[#allocation7 + $0x194] ss:$8 sps:$4 sm:$0xff]  }
 0x135   : > { %1820 = vmatpush1.bf16.msra.mxu1 %v3183_v30 }
 0x136   : > { %1821 = vmatprep.subr.bf16.mxu1 %v3188_v31  ;;  %2348 = vmatpush1.bf16.msra.mxu0 %v3273_v52  ;;  %v3303_v52 = vld [vmem:[#allocation7 + $0x190] ss:$8 sps:$4 sm:$0xff]  }
 0x137   : > { %2360 = vmatprep.subr.bf16.mxu0 %v3278_v55  ;;  %v3311_v55 = vld [vmem:[#allocation7 + $0x1b4] ss:$8 sps:$4 sm:$0xff]  }
 0x139   : > { %1822 = vmatpush1.bf16.msra.mxu1 %v3186_v33 }
 0x13a   : > { %1823 = vmatprep.subr.bf16.mxu1 %v3191_v16 }
 0x13d   : > { %1824 = vmatpush1.bf16.msra.mxu1 %v3189_v45 }
 0x13e   : > { %1825 = vmatprep.subr.bf16.mxu1 %v3194_v34  ;;  %v3276_v34 = vld [vmem:[#allocation7 + $0x100] ss:$8 sps:$4 sm:$0xff]  }
 0x141   : > { %1826 = vmatpush1.bf16.msra.mxu1 %v3192_v13  ;;  %v3281_v13 = vld [vmem:[#allocation7 + $0x114] ss:$8 sps:$4 sm:$0xff]  }
 0x142   : > { %1827 = vmatprep.subr.bf16.mxu1 %v3197_v36  ;;  %v3279_v36 = vld [vmem:[#allocation7 + $0x110] ss:$8 sps:$4 sm:$0xff]  }
 0x145   : > { %1828 = vmatpush1.bf16.msra.mxu1 %v3195_v37  ;;  %v3284_v37 = vld [vmem:[#allocation7 + $0x124] ss:$8 sps:$4 sm:$0xff]  }
 0x146   : > { %1829 = vmatprep.subr.bf16.mxu1 %v3200_v38  ;;  %v3282_v38 = vld [vmem:[#allocation7 + $0x120] ss:$8 sps:$4 sm:$0xff]  }
 0x149   : > { %1830 = vmatpush1.bf16.msra.mxu1 %v3198_v39  ;;  %v3287_v39 = vld [vmem:[#allocation7 + $0x134] ss:$8 sps:$4 sm:$0xff]  }
 0x14a   : > { %1831 = vmatprep.subr.bf16.mxu1 %v3203_v56  ;;  %v3285_v56 = vld [vmem:[#allocation7 + $0x130] ss:$8 sps:$4 sm:$0xff]  }
 0x14d   : > { %1832 = vmatpush1.bf16.msra.mxu1 %v3201_v40  ;;  %v3290_v40 = vld [vmem:[#allocation7 + $0x144] ss:$8 sps:$4 sm:$0xff]  }
 0x14e   : > { %1833 = vmatprep.subr.bf16.mxu1 %v3206_v41  ;;  %v3288_v41 = vld [vmem:[#allocation7 + $0x140] ss:$8 sps:$4 sm:$0xff]  }
 0x151   : > { %1834 = vmatpush1.bf16.msra.mxu1 %v3204_v44  ;;  %v3296_v44 = vld [vmem:[#allocation7 + $0x164] ss:$8 sps:$4 sm:$0xff]  }
 0x152   : > { %1835 = vmatprep.subr.bf16.mxu1 %v3209_v46  ;;  %v3294_v46 = vld [vmem:[#allocation7 + $0x160] ss:$8 sps:$4 sm:$0xff]  }
 0x155   : > { %1836 = vmatpush1.bf16.msra.mxu1 %v3207_v49  ;;  %v3302_v49 = vld [vmem:[#allocation7 + $0x184] ss:$8 sps:$4 sm:$0xff]  }
 0x156   : > { %1837 = vmatprep.subr.bf16.mxu1 %v3212_v50  ;;  %v3300_v50 = vld [vmem:[#allocation7 + $0x180] ss:$8 sps:$4 sm:$0xff]  }
 0x159   : > { %1838 = vmatpush1.bf16.msra.mxu1 %v3210_v53  ;;  %v3308_v53 = vld [vmem:[#allocation7 + $0x1a4] ss:$8 sps:$4 sm:$0xff]  }
 0x15a   : > { %1839 = vmatprep.subr.bf16.mxu1 %v3215_v54  ;;  %v3306_v54 = vld [vmem:[#allocation7 + $0x1a0] ss:$8 sps:$4 sm:$0xff]  }
 0x15d   : > { %1840 = vmatpush1.bf16.msra.mxu1 %v3213_v57  ;;  %v3309_v57 = vld [vmem:[#allocation7 + $0x1b0] ss:$8 sps:$4 sm:$0xff]  }
 0x15e   : > { %1841 = vmatprep.subr.bf16.mxu1 %v3218_v58  ;;  %v3314_v58 = vld [vmem:[#allocation7 + $0x1c4] ss:$8 sps:$4 sm:$0xff]  }
 0x161   : > { %1842 = vmatpush1.bf16.msra.mxu1 %v3216_v59  ;;  %v3312_v59 = vld [vmem:[#allocation7 + $0x1c0] ss:$8 sps:$4 sm:$0xff]  }
 0x162   : > { %1843 = vmatprep.subr.bf16.mxu1 %v3221_v60  ;;  %v3317_v60 = vld [vmem:[#allocation7 + $0x1d4] ss:$8 sps:$4 sm:$0xff]  }
 0x165   : > { %1844 = vmatpush1.bf16.msra.mxu1 %v3219_v61  ;;  %v3315_v61 = vld [vmem:[#allocation7 + $0x1d0] ss:$8 sps:$4 sm:$0xff]  }
 0x166   : > { %1845 = vmatprep.subr.bf16.mxu1 %v3224_v62  ;;  %v3320_v62 = vld [vmem:[#allocation7 + $0x1e4] ss:$8 sps:$4 sm:$0xff]  }
 0x169   : > { %1846 = vmatpush1.bf16.msra.mxu1 %v3222_v63  ;;  %v3318_v63 = vld [vmem:[#allocation7 + $0x1e0] ss:$8 sps:$4 sm:$0xff]  }
 0x16a   : > { %1858 = vmatprep.subr.bf16.mxu1 %v3227_v0  ;;  %v3323_v0 = vld [vmem:[#allocation7 + $0x1f4] ss:$8 sps:$4 sm:$0xff]  }
 0x16c   : > { %1848 = vmatmul.mubr.bf16.vlgmr.msra.gmra.mrb[4].mxu1 %v3701_v23  ;;  %v3727_v23 = vld [vmem:[%s3770_s2] sm:$0xf] }
 0x16d   : > { %1859 = vmatpush1.bf16.msra.mxu1 %v3225_v1  ;;  %1890 = vmatprep.mubr.bf16.mxu1 %v3467_v29  ;;  %v3730_v29 = vsub.s32 1, %v3719_v7  ;;  %v3321_v1 = vld [vmem:[#allocation7 + $0x1f0] ss:$8 sps:$4 sm:$0xff]  }
 0x16f   : > { %v560_v9 = vrot.slane %v3727_v23, %v3730_v29 }
 0x178   : > { %2754 = vmatmul.mubr.msk.bf16.vlgmr.msra.gmra.mrb[4].mxu1 %vm1553_vm0, %v3709_v35  ;;  %v556_v35 = vrot.slane %v3727_v23, %v3722_v8 }
 0x17f   : > { %v1591_v2 = vpop.f32.mrb[0].mxu1 }
 0x180   : > { %v1593_v3 = vpop.f32.mrb[1].mxu1  ;;  %v1592_v10 = vadd.f32 %v1591_v2, %v556_v35  ;;  %v563_v2 = vsub.s32 2, %v3719_v7 }
 0x181   : > { %v1595_v4 = vpop.f32.mrb[2].mxu1  ;;  %v1594_v11 = vadd.f32 %v1593_v3, %v560_v9  ;;  %v567_v3 = vsub.s32 3, %v3719_v7 }
 0x182   : > { %v1597_v5 = vpop.f32.mrb[3].mxu1  ;;  %v1596_v14 = vadd.f32 %v1595_v4, %v556_v35  ;;  %v564_v4 = vrot.slane %v3727_v23, %v563_v2 }
 0x183   : > { %v1598_v18 = vadd.f32 %v1597_v5, %v560_v9  ;;  %v568_v5 = vrot.slane %v3727_v23, %v567_v3  ;;  %v1985_v23 = vld [vmem:[%s3772_s4] sm:$0x3] }
 0x1cc   : > { %v1720_v12 = vpop.f32.mrb[0].mxu0 }
 0x1cd   : > { %v2825_v15 = vadd.f32 %v1720_v12, %v1592_v10  ;;  %v1722_v17 = vpop.f32.mrb[1].mxu0 }
 0x1ce   : > { %v2827_v19 = vadd.f32 %v1722_v17, %v1594_v11  ;;  %v1724_v20 = vpop.f32.mrb[2].mxu0 }
 0x1cf   : > { %v1901_v21 = vmul.f32 0.2, %v2825_v15  ;;  %v2829_v22 = vadd.f32 %v1724_v20, %v1596_v14  ;;  %v1726_v24 = vpop.f32.mrb[3].mxu0 }
 0x1d0   : > { %v1902_v25 = vmul.f32 0.2, %v2827_v19  ;;  %v2831_v26 = vadd.f32 %v1726_v24, %v1598_v18 }
 0x1d1   : > { %v1905_v27 = vmul.f32 0.2, %v2829_v22  ;;  %v1909_v30 = vmax.f32 %v2825_v15, %v1901_v21 }
 0x1d2   : > { %v1906_v28 = vmul.f32 0.2, %v2831_v26  ;;  %v1910_v32 = vmax.f32 %v2827_v19, %v1902_v25 }
 0x1d3   : > { %v1913_v31 = vmax.f32 %v2829_v22, %v1905_v27  ;;  %v1990_v27 = vrot.slane %v1985_v23, %v3722_v8 }
 0x1d4   : > { %v1914_v33 = vmax.f32 %v2831_v26, %v1906_v28  ;;  %v1994_v28 = vrot.slane %v1985_v23, %v3730_v29 }
 0x1d5   : > { %v1917_v16 = vpack.c.bf16 %v1913_v31, %v1909_v30  ;;  %v2411_v31 = vld [vmem:[%s3773_s5] sm:$0x3] }
 0x1d6   : > { %v1918_v45 = vpack.c.bf16 %v1914_v33, %v1910_v32 }
 0x1d8   : > { %2349 = vmatprep.mubr.bf16.mxu0 %v1918_v45 }
 0x1d9   : > { %2350 = vmatmul.mubr.bf16.vlgmr.msra.gmra.mrb[4].mxu0 %v1917_v16 }
 0x1da   : > { %2361 = vmatpush1.bf16.msra.mxu0 %v3276_v34 }
 0x1db   : > { %2362 = vmatprep.subr.bf16.mxu0 %v3281_v13 }
 0x1de   : > { %2363 = vmatpush1.bf16.msra.mxu0 %v3279_v36 }
 0x1df   : > { %2364 = vmatprep.subr.bf16.mxu0 %v3284_v37  ;;  %v2416_v37 = vrot.slane %v2411_v31, %v3722_v8  ;;  %v2819_v8 = vld [vmem:[#allocation2] ss:$0 sm:$0xff] }
 0x1e2   : > { %2365 = vmatpush1.bf16.msra.mxu0 %v3282_v38 }
 0x1e3   : > { %2366 = vmatprep.subr.bf16.mxu0 %v3287_v39 }
 0x1e6   : > { %2367 = vmatpush1.bf16.msra.mxu0 %v3285_v56  ;;  %v2420_v56 = vrot.slane %v2411_v31, %v3730_v29 }
 0x1e7   : > { %2368 = vmatprep.subr.bf16.mxu0 %v3290_v40 }
 0x1ea   : > { %2369 = vmatpush1.bf16.msra.mxu0 %v3288_v41 }
 0x1eb   : > { %2370 = vmatprep.subr.bf16.mxu0 %v3293_v42 }
 0x1ee   : > { %2371 = vmatpush1.bf16.msra.mxu0 %v3291_v43 }
 0x1ef   : > { %2372 = vmatprep.subr.bf16.mxu0 %v3296_v44 }
 0x1f2   : > { %2373 = vmatpush1.bf16.msra.mxu0 %v3294_v46 }
 0x1f3   : > { %2374 = vmatprep.subr.bf16.mxu0 %v3299_v47 }
 0x1f6   : > { %2375 = vmatpush1.bf16.msra.mxu0 %v3297_v48 }
 0x1f7   : > { %2376 = vmatprep.subr.bf16.mxu0 %v3302_v49 }
 0x1fa   : > { %2377 = vmatpush1.bf16.msra.mxu0 %v3300_v50 }
 0x1fb   : > { %2378 = vmatprep.subr.bf16.mxu0 %v3305_v51 }
 0x1fe   : > { %2379 = vmatpush1.bf16.msra.mxu0 %v3303_v52 }
 0x1ff   : > { %2380 = vmatprep.subr.bf16.mxu0 %v3308_v53 }
 0x202   : > { %2381 = vmatpush1.bf16.msra.mxu0 %v3306_v54 }
 0x203   : > { %2382 = vmatprep.subr.bf16.mxu0 %v3311_v55 }
 0x206   : > { %2383 = vmatpush1.bf16.msra.mxu0 %v3309_v57 }
 0x207   : > { %2384 = vmatprep.subr.bf16.mxu0 %v3314_v58 }
 0x20a   : > { %2385 = vmatpush1.bf16.msra.mxu0 %v3312_v59 }
 0x20b   : > { %2386 = vmatprep.subr.bf16.mxu0 %v3317_v60 }
 0x20e   : > { %2387 = vmatpush1.bf16.msra.mxu0 %v3315_v61 }
 0x20f   : > { %2388 = vmatprep.subr.bf16.mxu0 %v3320_v62 }
 0x212   : > { %2389 = vmatpush1.bf16.msra.mxu0 %v3318_v63 }
 0x213   : > { %2390 = vmatprep.subr.bf16.mxu0 %v3323_v0 }
 0x216   : > { %2391 = vmatpush1.bf16.msra.mxu0 %v3321_v1 }
 0x24b   : > { %v1892_v6 = vpop.f32.mrb[4].mxu1 }
 0x24c   : > { %v2832_v35 = vadd.f32 %v1892_v6, %v564_v4  ;;  %v1894_v9 = vpop.f32.mrb[5].mxu1 }
 0x24d   : > { %v2833_v10 = vadd.f32 %v1894_v9, %v568_v5  ;;  %v1896_v11 = vpop.f32.mrb[6].mxu1 }
 0x24e   : > { %v1903_v12 = vmul.f32 0.2, %v2832_v35  ;;  %v2834_v14 = vadd.f32 %v1896_v11, %v564_v4  ;;  %v1898_v15 = vpop.f32.mrb[7].mxu1 }
 0x24f   : > { %v1904_v17 = vmul.f32 0.2, %v2833_v10  ;;  %v2835_v18 = vadd.f32 %v1898_v15, %v568_v5 }
 0x250   : > { %v1907_v19 = vmul.f32 0.2, %v2834_v14  ;;  %v1911_v21 = vmax.f32 %v2832_v35, %v1903_v12 }
 0x251   : > { %v1908_v20 = vmul.f32 0.2, %v2835_v18  ;;  %v1912_v24 = vmax.f32 %v2833_v10, %v1904_v17 }
 0x252   : > { %v1915_v22 = vmax.f32 %v2834_v14, %v1907_v19 }
 0x253   : > { %v1916_v7 = vmax.f32 %v2835_v18, %v1908_v20 }
 0x254   : > { %v1919_v25 = vpack.c.bf16 %v1915_v22, %v1911_v21 }
 0x255   : > { %v1920_v26 = vpack.c.bf16 %v1916_v7, %v1912_v24 }
 0x257   : > { %2392 = vmatprep.mubr.bf16.mxu0 %v1920_v26 }
 0x258   : > { %2393 = vmatmul.mubr.bf16.vlgmr.msra.gmra.mrb[4].mxu0 %v1919_v25 }
 0x32b   : > { %v2394_v30 = vpop.f32.mrb[4].mxu0 }
 0x32c   : > { %v2836_v32 = vadd.f32 %v2394_v30, %v1990_v27  ;;  %v2396_v33 = vpop.f32.mrb[5].mxu0 }
 0x32d   : > { %v2837_v16 = vadd.f32 %v2396_v33, %v1994_v28  ;;  %v2398_v45 = vpop.f32.mrb[6].mxu0 }
 0x32e   : > { %v2403_v34 = vmul.f32 0.2, %v2836_v32  ;;  %v2838_v13 = vadd.f32 %v2398_v45, %v1990_v27  ;;  %v2400_v36 = vpop.f32.mrb[7].mxu0 }
 0x32f   : > { %v2404_v38 = vmul.f32 0.2, %v2837_v16  ;;  %v2839_v39 = vadd.f32 %v2400_v36, %v1994_v28 }
 0x330   : > { %v2407_v40 = vmax.f32 %v2836_v32, %v2403_v34  ;;  %v2405_v41 = vmul.f32 0.2, %v2838_v13 }
 0x331   : > { %v2408_v42 = vmax.f32 %v2837_v16, %v2404_v38  ;;  %v2406_v43 = vmul.f32 0.2, %v2839_v39 }
 0x332   : > { %v2409_v44 = vmax.f32 %v2838_v13, %v2405_v41  ;;  %v2423_v46 = vmul.f32 %v2416_v37, %v2407_v40 }
 0x333   : > { %v2410_v47 = vmax.f32 %v2839_v39, %v2406_v43  ;;  %v2424_v48 = vmul.f32 %v2420_v56, %v2408_v42 }
 0x334   : > { %v2425_v49 = vmul.f32 %v2416_v37, %v2409_v44 }
 0x335   : > { %v2427_v50 = vadd.f32 %v2424_v48, %v2423_v46  ;;  %v2426_v51 = vmul.f32 %v2420_v56, %v2410_v47 }
 0x337   : > { %2428 = vadd.xlane.f32.xlu0 %v2427_v50  ;;  %v2430_v52 = vadd.f32 %v2426_v51, %v2425_v49 }
 0x33b   : > { %2431 = vadd.xlane.f32.xlu0 %v2430_v52 }
 0x3c4   : > { %v2429_v53 = vpop.xlane.xlu0 %2428 }
 0x3c5   : > { %v2440_v54 = vadd.f32 %v2819_v8, %v2429_v53 }
 0x3c7   : > { %v2820_v55 = vmul.f32 -1.442695, %v2440_v54 }
 0x3c8   : > { %v2432_v29 = vpop.xlane.xlu0 %2431 }
 0x3c9   : > { %3324 = vpow2.f32 %v2820_v55  ;;  %v2441_v57 = vadd.f32 %v2819_v8, %v2432_v29 }
 0x3cb   : > { %v2821_v58 = vmul.f32 -1.442695, %v2441_v57 }
 0x3cd   : > { %3326 = vpow2.f32 %v2821_v58 }
 0x3d3   : > { %v3325_v59 = vpop.eup %3324 }
 0x3d4   : > { %v2448_v60 = vadd.f32 1.0, %v3325_v59 }
 0x3d6   : > { %3328 = vrcp.f32 %v2448_v60 }
 0x3d7   : > { %v3327_v61 = vpop.eup %3326 }
 0x3d8   : > { %v2449_v62 = vadd.f32 1.0, %v3327_v61 }
 0x3da   : > { %3330 = vrcp.f32 %v2449_v62 }
 0x3e0   : > { %v3329_v63 = vpop.eup %3328 }
 0x3e1   : > { %2455 = vst.msk [vmem:[%s331_s12] sm:$0xff] %vm2454_vm1, %v3329_v63 }
 0x3e4   : > { %v3331_v0 = vpop.eup %3330 }
 0x3e5   : > { %2456 = vst.msk [vmem:[%s331_s12 + $0x8] sm:$0xff] %vm2454_vm1, %v3331_v0 }
 0x3e6 PF: > { %p20_p6 = scmp.ge.s32.totalorder %s3607_s24, 4   ;;  %s3788_s26 = smov %s3448_s27 }
 0x3e7   : > { %s3789_s27 = smov %s3452_s28  ;;  %s3790_s28 = smov %s3616_s10 }
 0x3e8   : > { %s3791_s29 = smov %s3607_s24  ;;  %22 = sbr.rel (!%p20_p6) target bundleno = 7 (0x7), region = 96 }
 0x3ef   :  { %2479 = vsyncpa [#allocation4], 1 }
 0x3f0   :  { %2481 = vsyncpa [#allocation4 + $0x1], 1 }
 0x3f1   :  { %2482 = vsyncpa [#allocation6], 1 }

</bundles_post_ra>
